<compile_context>
chip_gen: v6e
topology: v6e:2x2x1
jax: 0.10.0
libtpu: 0.0.40
codegen_flags: <defaults>
</compile_context>

<pallas_src>
import functools

import jax
import jax.numpy as jnp
from jax.experimental import pallas as pl
from jax.experimental.pallas import tpu as pltpu


C_LANES = 128  # all activations / weights carried with a lane-dense 128 channel dim

_CPARAMS = pltpu.CompilerParams(
    dimension_semantics=("parallel",),          # batch axis -> both TCs on v7x
    vmem_limit_bytes=32 * 1024 * 1024,          # explicit; fits v5e/v6e/v7x budgets
)


def _round_up(v, m):
    return (v + m - 1) // m * m


# ----------------------------- fused Pallas kernel ------------------------------
# Activations are (M, 128) tiles: M = flattened spatial with a fixed, 8-aligned row
# stride S1, channels lane-dense (padded to 128).  A 3x3 conv tap (di, dj) is the
# constant flat shift di*S1 + dj (dilated by 2 per max-pool).  Rows whose column
# index exceeds the valid width are garbage but are never read by any valid
# downstream output (asserted in the wrapper).

def _fused_kernel(p_ref, w1_ref, b1_ref, w2_ref, b2_ref, w3_ref, b3_ref,
                  wfc_ref, bfc_ref, o_ref, y1_ref, a2_ref, *,
                  s1, m2, mp1, m3, pool_offsets, pool_anchors):
    # ---- conv1 (stem): one K>=128 MXU dot on im2col'ed patches + bias + ReLU ----
    y1 = jnp.dot(p_ref[...], w1_ref[...], preferred_element_type=jnp.float32)
    y1_ref[...] = jnp.maximum(y1 + b1_ref[...], 0.0).astype(y1_ref.dtype)

    # ---- conv2 3x3 + bias + ReLU + fused 2x2/stride-2 max pool -----------------
    # outer-dj: one (possibly misaligned) column slice per dj; inner-di offsets are
    # multiples of the 8-aligned row stride s1 (no per-tap realignment).
    span2 = 2 * s1 + m2
    a2_ref[...] = jnp.zeros_like(a2_ref)
    for dj in range(3):
        col = y1_ref[dj:dj + span2, :]
        for di in range(3):
            a2_ref[...] += jnp.dot(col[di * s1:di * s1 + m2, :],
                                   w2_ref[3 * di + dj],
                                   preferred_element_type=jnp.float32)
    y2 = jnp.maximum(a2_ref[...] + b2_ref[...], 0.0)
    pooled = jnp.maximum(
        jnp.maximum(y2[0:mp1, :], y2[1:mp1 + 1, :]),
        jnp.maximum(y2[s1:s1 + mp1, :], y2[s1 + 1:s1 + 1 + mp1, :]),
    ).astype(jnp.bfloat16)        # dilated flat layout: row stride 2*s1, col stride 2

    # ---- conv3 3x3 on the dilated layout: 3 independent partial accumulators ---
    span3 = 4 * s1 + m3
    parts = []
    for dj in range(3):
        col = pooled[2 * dj:2 * dj + span3, :]
        part = jnp.dot(col[0:m3, :], w3_ref[dj], preferred_element_type=jnp.float32)
        for di in range(1, 3):
            part = part + jnp.dot(col[2 * s1 * di:2 * s1 * di + m3, :],
                                  w3_ref[3 * di + dj],
                                  preferred_element_type=jnp.float32)
        parts.append(part)
    y3 = jnp.maximum(parts[0] + parts[1] + parts[2] + b3_ref[...], 0.0)

    # ---- 2x2 max pool + adaptive avg pool (1,1) + fc head ----------------------
    feat = jnp.zeros((1, C_LANES), jnp.float32)
    for base in pool_anchors:                    # static, tiny
        m = y3[base + pool_offsets[0]:base + pool_offsets[0] + 1, :]
        for off in pool_offsets[1:]:
            m = jnp.maximum(m, y3[base + off:base + off + 1, :])
        feat = feat + m
    feat = feat * (1.0 / float(len(pool_anchors)))          # global average (constant)

    o_ref[...] = jnp.dot(feat.astype(jnp.bfloat16), wfc_ref[...],
                         preferred_element_type=jnp.float32) + bfc_ref[...]


# ------------------------------ param / input helpers ---------------------------

def _pad_last(a, target):
    pad = target - a.shape[-1]
    if pad <= 0:
        return a
    return jnp.pad(a, [(0, 0)] * (a.ndim - 1) + [(0, pad)])


def _im2col_stem(x_nchw, kh, kw, s1, k_pad):
    """(N,Cin,H,W) -> (N, Ho*s1, k_pad) bf16 patches, tap-major (di,dj,cin), zero-padded."""
    N, cin, H, W = x_nchw.shape
    Ho, Wo = H - kh + 1, W - kw + 1
    x = jnp.transpose(x_nchw, (0, 2, 3, 1))                          # NHWC
    taps = [x[:, di:di + Ho, dj:dj + Wo, :]
            for di in range(kh) for dj in range(kw)]
    p = jnp.concatenate(taps, axis=-1)                               # (N,Ho,Wo,cin*kh*kw)
    p = jnp.pad(p, ((0, 0), (0, 0), (0, s1 - Wo), (0, k_pad - cin * kh * kw)))
    return p.reshape(N, Ho * s1, k_pad).astype(jnp.bfloat16)


def _prep_stem_w(w_oihw, k_pad):
    """(Cout,Cin,KH,KW) -> (k_pad, 128) bf16, rows ordered (di,dj,cin)."""
    cout, cin, kh, kw = w_oihw.shape
    wt = jnp.transpose(w_oihw, (2, 3, 1, 0)).reshape(kh * kw * cin, cout)
    wt = jnp.pad(wt, ((0, k_pad - kh * kw * cin), (0, C_LANES - cout)))
    return wt.astype(jnp.bfloat16)


def _prep_conv_w(w_oihw):
    """(Cout,Cin,KH,KW) -> (KH*KW, 128, 128) bf16, tap-major, zero padded."""
    cout, cin, kh, kw = w_oihw.shape
    wt = jnp.transpose(w_oihw, (2, 3, 1, 0)).reshape(kh * kw, cin, cout)
    wt = jnp.pad(wt, ((0, 0), (0, C_LANES - cin), (0, C_LANES - cout)))
    return wt.astype(jnp.bfloat16)


def _prep_bias(b):
    return jnp.pad(b, (0, C_LANES - b.shape[0])).reshape(1, C_LANES).astype(jnp.float32)


def _prep_fc_w(w):
    wt = jnp.transpose(w, (1, 0))
    wt = jnp.pad(wt, ((0, C_LANES - wt.shape[0]), (0, C_LANES - wt.shape[1])))
    return wt.astype(jnp.bfloat16)


# ------------------------------ model forward -----------------------------------

def init_params(key, num_classes=18):
    ks = jax.random.split(key, 8)
    return {
        "w1": jax.random.normal(ks[0], (32, 3, 7, 7), jnp.float32) * 0.05,
        "b1": jax.random.normal(ks[1], (32,), jnp.float32) * 0.05,
        "w2": jax.random.normal(ks[2], (64, 32, 3, 3), jnp.float32) * 0.05,
        "b2": jax.random.normal(ks[3], (64,), jnp.float32) * 0.05,
        "w3": jax.random.normal(ks[4], (128, 64, 3, 3), jnp.float32) * 0.05,
        "b3": jax.random.normal(ks[5], (128,), jnp.float32) * 0.05,
        "wfc": jax.random.normal(ks[6], (num_classes, 128), jnp.float32) * 0.05,
        "bfc": jax.random.normal(ks[7], (num_classes,), jnp.float32) * 0.05,
    }


def base_model_forward(x_nchw, params):
    N, Cin, H, W = x_nchw.shape
    num_classes = params["wfc"].shape[0]

    # ---- static layout bookkeeping (flat spatial, 8-aligned row stride S1) ----
    Ho1, Wo1 = H - 6, W - 6                       # conv1 7x7 valid
    S1 = _round_up(max(Wo1, 8), 8)                # padded row stride (multiple of 8)
    M1 = Ho1 * S1
    K1 = _round_up(Cin * 49, C_LANES)             # stem contraction padded to lanes

    Ho2, Wo2 = Ho1 - 2, Wo1 - 2                   # conv2 3x3 valid
    M2_raw = (Ho2 - 1) * S1 + Wo2
    M2 = _round_up(M2_raw, 8)
    Mp1 = M2_raw - S1 - 1                         # rows after fused 2x2 max pool
    Hp1, Wp1 = Ho2 // 2, Wo2 // 2

    Ho3, Wo3 = Hp1 - 2, Wp1 - 2                   # conv3 3x3 on dilated (2*S1, 2) layout
    M3 = 2 * S1 * (Ho3 - 1) + 2 * (Wo3 - 1) + 1
    Hp2, Wp2 = Ho3 // 2, Wo3 // 2
    pool_offsets = (0, 2, 2 * S1, 2 * S1 + 2)
    pool_anchors = tuple(4 * S1 * hp + 4 * wp for hp in range(Hp2) for wp in range(Wp2))

    assert Ho3 >= 2 and Wo3 >= 2 and Hp2 >= 1 and Wp2 >= 1, "input too small"
    assert 2 * S1 + 2 + M2 <= M1                  # conv2 tap reads stay inside y1
    assert S1 + 1 + Mp1 <= M2                     # pool1 reads stay inside conv2 acc
    assert 4 + 4 * S1 + M3 <= Mp1                 # conv3 tap reads stay inside pooled
    assert max(pool_anchors) + max(pool_offsets) < M3

    # ---- inputs / weights in kernel layout ----
    p = _im2col_stem(x_nchw, 7, 7, S1, K1)
    w1 = _prep_stem_w(params["w1"], K1)
    w2 = _prep_conv_w(params["w2"])
    w3 = _prep_conv_w(params["w3"])
    b1, b2, b3 = (_prep_bias(params[k]) for k in ("b1", "b2", "b3"))
    wfc = _prep_fc_w(params["wfc"])
    bfc = _prep_bias(params["bfc"])

    # ---- single fused pallas_call: conv1 | conv2+pool | conv3+pool+avg+fc ----
    logits_p = pl.pallas_call(
        functools.partial(_fused_kernel, s1=S1, m2=M2, mp1=Mp1, m3=M3,
                          pool_offsets=pool_offsets, pool_anchors=pool_anchors),
        out_shape=jax.ShapeDtypeStruct((N, 1, C_LANES), jnp.float32),
        grid=(N,),
        in_specs=[
            pl.BlockSpec((None, M1, K1), lambda n: (n, 0, 0)),
            pl.BlockSpec((K1, C_LANES), lambda n: (0, 0)),
            pl.BlockSpec((1, C_LANES), lambda n: (0, 0)),
            pl.BlockSpec((9, C_LANES, C_LANES), lambda n: (0, 0, 0)),
            pl.BlockSpec((1, C_LANES), lambda n: (0, 0)),
            pl.BlockSpec((9, C_LANES, C_LANES), lambda n: (0, 0, 0)),
            pl.BlockSpec((1, C_LANES), lambda n: (0, 0)),
            pl.BlockSpec((C_LANES, C_LANES), lambda n: (0, 0)),
            pl.BlockSpec((1, C_LANES), lambda n: (0, 0)),
        ],
        out_specs=pl.BlockSpec((None, 1, C_LANES), lambda n: (n, 0, 0)),
        scratch_shapes=[
            pltpu.VMEM((M1, C_LANES), jnp.bfloat16),   # conv1 output (dense, stride S1)
            pltpu.VMEM((M2, C_LANES), jnp.float32),    # conv2 f32 accumulator
        ],
        compiler_params=_CPARAMS,
    )(p, w1, b1, w2, b2, w3, b3, wfc, bfc)

    return logits_p[:, 0, :num_classes]            # drop lane padding -> (N, num_classes)


# ----------------------------------- main ----------------------------------------

if __name__ == "__main__":
    num_classes = 18
    key = jax.random.PRNGKey(0)
    k_x, k_p = jax.random.split(key)

    x = jax.random.normal(k_x, (2, 3, 16, 16), jnp.float32)   # NCHW input
    params = init_params(k_p, num_classes)

    fwd = jax.jit(base_model_forward)
    out = jax.block_until_ready(fwd(x, params))

    assert out.shape == (2, num_classes), out.shape
    assert bool(jnp.all(jnp.isfinite(out)))
    print("KERNEL_OK")
</pallas_src>

<mosaic_0001>
module attributes {stable_mosaic.version = 11 : i64} {
  func.func @_fused_kernel(%arg0: i32, %arg1: memref<1x160x256xbf16, #tpu.memory_space<vmem>>, %arg2: memref<256x128xbf16, #tpu.memory_space<vmem>>, %arg3: memref<1x128xf32, #tpu.memory_space<vmem>>, %arg4: memref<9x128x128xbf16, #tpu.memory_space<vmem>>, %arg5: memref<1x128xf32, #tpu.memory_space<vmem>>, %arg6: memref<9x128x128xbf16, #tpu.memory_space<vmem>>, %arg7: memref<1x128xf32, #tpu.memory_space<vmem>>, %arg8: memref<128x128xbf16, #tpu.memory_space<vmem>>, %arg9: memref<1x128xf32, #tpu.memory_space<vmem>>, %arg10: memref<1x1x128xf32, #tpu.memory_space<vmem>>, %arg11: memref<160x128xbf16, #tpu.memory_space<vmem>>, %arg12: memref<120x128xf32, #tpu.memory_space<vmem>>) attributes {dimension_semantics = [#tpu.dimension_semantics<parallel>], iteration_bounds = array<i64: 2>, scalar_prefetch = 0 : i64, scratch_operands = 2 : i64, tpu.core_type = #tpu.core_type<tc>, window_params = [{transform_indices = @transform_0, window_bounds = array<i64: 1, 160, 256>}, {pipeline_mode = #tpu.pipeline_mode<synchronous>, transform_indices = @transform_1, window_bounds = array<i64: 256, 128>}, {pipeline_mode = #tpu.pipeline_mode<synchronous>, transform_indices = @transform_2, window_bounds = array<i64: 1, 128>}, {pipeline_mode = #tpu.pipeline_mode<synchronous>, transform_indices = @transform_3, window_bounds = array<i64: 9, 128, 128>}, {pipeline_mode = #tpu.pipeline_mode<synchronous>, transform_indices = @transform_4, window_bounds = array<i64: 1, 128>}, {pipeline_mode = #tpu.pipeline_mode<synchronous>, transform_indices = @transform_5, window_bounds = array<i64: 9, 128, 128>}, {pipeline_mode = #tpu.pipeline_mode<synchronous>, transform_indices = @transform_6, window_bounds = array<i64: 1, 128>}, {pipeline_mode = #tpu.pipeline_mode<synchronous>, transform_indices = @transform_7, window_bounds = array<i64: 128, 128>}, {pipeline_mode = #tpu.pipeline_mode<synchronous>, transform_indices = @transform_8, window_bounds = array<i64: 1, 128>}, {transform_indices = @transform_9, window_bounds = array<i64: 1, 1, 128>}]} {
    %c0 = arith.constant 0 : index
    %c0_0 = arith.constant 0 : index
    %c0_1 = arith.constant 0 : index
    %0 = vector.load %arg1[%c0, %c0_0, %c0_1] : memref<1x160x256xbf16, #tpu.memory_space<vmem>>, vector<1x160x256xbf16>
    %1 = vector.shape_cast %0 : vector<1x160x256xbf16> to vector<160x256xbf16>
    %c0_2 = arith.constant 0 : index
    %c0_3 = arith.constant 0 : index
    %2 = vector.load %arg2[%c0_2, %c0_3] : memref<256x128xbf16, #tpu.memory_space<vmem>>, vector<256x128xbf16>
    %cst = arith.constant dense<0.000000e+00> : vector<160x128xf32>
    %3 = tpu.matmul %1, %2, %cst {dimension_numbers = #tpu.dot_dimension_numbers<[1], [0], [0], [1], [0, 0, 1, 1], [], []>} : vector<160x256xbf16>, vector<256x128xbf16>, vector<160x128xf32> -> vector<160x128xf32>
    %c0_4 = arith.constant 0 : index
    %c0_5 = arith.constant 0 : index
    %4 = vector.load %arg3[%c0_4, %c0_5] : memref<1x128xf32, #tpu.memory_space<vmem>>, vector<1x128xf32>
    %5 = vector.broadcast %4 : vector<1x128xf32> to vector<160x128xf32>
    %6 = arith.addf %3, %5 : vector<160x128xf32>
    %cst_6 = arith.constant 0.000000e+00 : f32
    %7 = vector.broadcast %cst_6 : f32 to vector<160x128xf32>
    %8 = arith.maximumf %6, %7 : vector<160x128xf32>
    %9 = arith.truncf %8 : vector<160x128xf32> to vector<160x128xbf16>
    %c0_7 = arith.constant 0 : index
    %c0_8 = arith.constant 0 : index
    %10 = vector.load %arg11[%c0_7, %c0_8] : memref<160x128xbf16, #tpu.memory_space<vmem>>, vector<160x128xbf16>
    tpu.vector_store %arg11[%c0_7, %c0_8], %9 {strides = array<i32>} : memref<160x128xbf16, #tpu.memory_space<vmem>>, vector<160x128xbf16>,
    %cst_9 = arith.constant 0.000000e+00 : f32
    %11 = vector.broadcast %cst_9 : f32 to vector<120x128xf32>
    %c0_10 = arith.constant 0 : index
    %c0_11 = arith.constant 0 : index
    %12 = vector.load %arg12[%c0_10, %c0_11] : memref<120x128xf32, #tpu.memory_space<vmem>>, vector<120x128xf32>
    tpu.vector_store %arg12[%c0_10, %c0_11], %11 {strides = array<i32>} : memref<120x128xf32, #tpu.memory_space<vmem>>, vector<120x128xf32>,
    %c0_12 = arith.constant 0 : index
    %c0_13 = arith.constant 0 : index
    %13 = vector.load %arg11[%c0_12, %c0_13] : memref<160x128xbf16, #tpu.memory_space<vmem>>, vector<152x128xbf16>
    %c0_14 = arith.constant 0 : index
    %c0_15 = arith.constant 0 : index
    %14 = vector.load %arg12[%c0_14, %c0_15] : memref<120x128xf32, #tpu.memory_space<vmem>>, vector<120x128xf32>
    %15 = vector.extract_strided_slice %13 {offsets = [0, 0], sizes = [120, 128], strides = [1, 1]} : vector<152x128xbf16> to vector<120x128xbf16>
    %c0_16 = arith.constant 0 : index
    %c0_17 = arith.constant 0 : index
    %c0_18 = arith.constant 0 : index
    %16 = vector.load %arg4[%c0_16, %c0_17, %c0_18] : memref<9x128x128xbf16, #tpu.memory_space<vmem>>, vector<1x128x128xbf16>
    %17 = vector.shape_cast %16 : vector<1x128x128xbf16> to vector<128x128xbf16>
    %cst_19 = arith.constant dense<0.000000e+00> : vector<120x128xf32>
    %18 = tpu.matmul %15, %17, %cst_19 {dimension_numbers = #tpu.dot_dimension_numbers<[1], [0], [0], [1], [0, 0, 1, 1], [], []>} : vector<120x128xbf16>, vector<128x128xbf16>, vector<120x128xf32> -> vector<120x128xf32>
    %19 = arith.addf %14, %18 : vector<120x128xf32>
    %c0_20 = arith.constant 0 : index
    %c0_21 = arith.constant 0 : index
    %20 = vector.load %arg12[%c0_20, %c0_21] : memref<120x128xf32, #tpu.memory_space<vmem>>, vector<120x128xf32>
    tpu.vector_store %arg12[%c0_20, %c0_21], %19 {strides = array<i32>} : memref<120x128xf32, #tpu.memory_space<vmem>>, vector<120x128xf32>,
    %c0_22 = arith.constant 0 : index
    %c0_23 = arith.constant 0 : index
    %21 = vector.load %arg12[%c0_22, %c0_23] : memref<120x128xf32, #tpu.memory_space<vmem>>, vector<120x128xf32>
    %22 = vector.extract_strided_slice %13 {offsets = [16, 0], sizes = [120, 128], strides = [1, 1]} : vector<152x128xbf16> to vector<120x128xbf16>
    %c3 = arith.constant 3 : index
    %c0_24 = arith.constant 0 : index
    %c0_25 = arith.constant 0 : index
    %23 = vector.load %arg4[%c3, %c0_24, %c0_25] : memref<9x128x128xbf16, #tpu.memory_space<vmem>>, vector<1x128x128xbf16>
    %24 = vector.shape_cast %23 : vector<1x128x128xbf16> to vector<128x128xbf16>
    %cst_26 = arith.constant dense<0.000000e+00> : vector<120x128xf32>
    %25 = tpu.matmul %22, %24, %cst_26 {dimension_numbers = #tpu.dot_dimension_numbers<[1], [0], [0], [1], [0, 0, 1, 1], [], []>} : vector<120x128xbf16>, vector<128x128xbf16>, vector<120x128xf32> -> vector<120x128xf32>
    %26 = arith.addf %21, %25 : vector<120x128xf32>
    %c0_27 = arith.constant 0 : index
    %c0_28 = arith.constant 0 : index
    %27 = vector.load %arg12[%c0_27, %c0_28] : memref<120x128xf32, #tpu.memory_space<vmem>>, vector<120x128xf32>
    tpu.vector_store %arg12[%c0_27, %c0_28], %26 {strides = array<i32>} : memref<120x128xf32, #tpu.memory_space<vmem>>, vector<120x128xf32>,
    %c0_29 = arith.constant 0 : index
    %c0_30 = arith.constant 0 : index
    %28 = vector.load %arg12[%c0_29, %c0_30] : memref<120x128xf32, #tpu.memory_space<vmem>>, vector<120x128xf32>
    %29 = vector.extract_strided_slice %13 {offsets = [32, 0], sizes = [120, 128], strides = [1, 1]} : vector<152x128xbf16> to vector<120x128xbf16>
    %c6 = arith.constant 6 : index
    %c0_31 = arith.constant 0 : index
    %c0_32 = arith.constant 0 : index
    %30 = vector.load %arg4[%c6, %c0_31, %c0_32] : memref<9x128x128xbf16, #tpu.memory_space<vmem>>, vector<1x128x128xbf16>
    %31 = vector.shape_cast %30 : vector<1x128x128xbf16> to vector<128x128xbf16>
    %cst_33 = arith.constant dense<0.000000e+00> : vector<120x128xf32>
    %32 = tpu.matmul %29, %31, %cst_33 {dimension_numbers = #tpu.dot_dimension_numbers<[1], [0], [0], [1], [0, 0, 1, 1], [], []>} : vector<120x128xbf16>, vector<128x128xbf16>, vector<120x128xf32> -> vector<120x128xf32>
    %33 = arith.addf %28, %32 : vector<120x128xf32>
    %c0_34 = arith.constant 0 : index
    %c0_35 = arith.constant 0 : index
    %34 = vector.load %arg12[%c0_34, %c0_35] : memref<120x128xf32, #tpu.memory_space<vmem>>, vector<120x128xf32>
    tpu.vector_store %arg12[%c0_34, %c0_35], %33 {strides = array<i32>} : memref<120x128xf32, #tpu.memory_space<vmem>>, vector<120x128xf32>,
    %c1 = arith.constant 1 : index
    %c0_36 = arith.constant 0 : index
    %35 = vector.load %arg11[%c1, %c0_36] : memref<160x128xbf16, #tpu.memory_space<vmem>>, vector<152x128xbf16>
    %c0_37 = arith.constant 0 : index
    %c0_38 = arith.constant 0 : index
    %36 = vector.load %arg12[%c0_37, %c0_38] : memref<120x128xf32, #tpu.memory_space<vmem>>, vector<120x128xf32>
    %37 = vector.extract_strided_slice %35 {offsets = [0, 0], sizes = [120, 128], strides = [1, 1]} : vector<152x128xbf16> to vector<120x128xbf16>
    %c1_39 = arith.constant 1 : index
    %c0_40 = arith.constant 0 : index
    %c0_41 = arith.constant 0 : index
    %38 = vector.load %arg4[%c1_39, %c0_40, %c0_41] : memref<9x128x128xbf16, #tpu.memory_space<vmem>>, vector<1x128x128xbf16>
    %39 = vector.shape_cast %38 : vector<1x128x128xbf16> to vector<128x128xbf16>
    %cst_42 = arith.constant dense<0.000000e+00> : vector<120x128xf32>
    %40 = tpu.matmul %37, %39, %cst_42 {dimension_numbers = #tpu.dot_dimension_numbers<[1], [0], [0], [1], [0, 0, 1, 1], [], []>} : vector<120x128xbf16>, vector<128x128xbf16>, vector<120x128xf32> -> vector<120x128xf32>
    %41 = arith.addf %36, %40 : vector<120x128xf32>
    %c0_43 = arith.constant 0 : index
    %c0_44 = arith.constant 0 : index
    %42 = vector.load %arg12[%c0_43, %c0_44] : memref<120x128xf32, #tpu.memory_space<vmem>>, vector<120x128xf32>
    tpu.vector_store %arg12[%c0_43, %c0_44], %41 {strides = array<i32>} : memref<120x128xf32, #tpu.memory_space<vmem>>, vector<120x128xf32>,
    %c0_45 = arith.constant 0 : index
    %c0_46 = arith.constant 0 : index
    %43 = vector.load %arg12[%c0_45, %c0_46] : memref<120x128xf32, #tpu.memory_space<vmem>>, vector<120x128xf32>
    %44 = vector.extract_strided_slice %35 {offsets = [16, 0], sizes = [120, 128], strides = [1, 1]} : vector<152x128xbf16> to vector<120x128xbf16>
    %c4 = arith.constant 4 : index
    %c0_47 = arith.constant 0 : index
    %c0_48 = arith.constant 0 : index
    %45 = vector.load %arg4[%c4, %c0_47, %c0_48] : memref<9x128x128xbf16, #tpu.memory_space<vmem>>, vector<1x128x128xbf16>
    %46 = vector.shape_cast %45 : vector<1x128x128xbf16> to vector<128x128xbf16>
    %cst_49 = arith.constant dense<0.000000e+00> : vector<120x128xf32>
    %47 = tpu.matmul %44, %46, %cst_49 {dimension_numbers = #tpu.dot_dimension_numbers<[1], [0], [0], [1], [0, 0, 1, 1], [], []>} : vector<120x128xbf16>, vector<128x128xbf16>, vector<120x128xf32> -> vector<120x128xf32>
    %48 = arith.addf %43, %47 : vector<120x128xf32>
    %c0_50 = arith.constant 0 : index
    %c0_51 = arith.constant 0 : index
    %49 = vector.load %arg12[%c0_50, %c0_51] : memref<120x128xf32, #tpu.memory_space<vmem>>, vector<120x128xf32>
    tpu.vector_store %arg12[%c0_50, %c0_51], %48 {strides = array<i32>} : memref<120x128xf32, #tpu.memory_space<vmem>>, vector<120x128xf32>,
    %c0_52 = arith.constant 0 : index
    %c0_53 = arith.constant 0 : index
    %50 = vector.load %arg12[%c0_52, %c0_53] : memref<120x128xf32, #tpu.memory_space<vmem>>, vector<120x128xf32>
    %51 = vector.extract_strided_slice %35 {offsets = [32, 0], sizes = [120, 128], strides = [1, 1]} : vector<152x128xbf16> to vector<120x128xbf16>
    %c7 = arith.constant 7 : index
    %c0_54 = arith.constant 0 : index
    %c0_55 = arith.constant 0 : index
    %52 = vector.load %arg4[%c7, %c0_54, %c0_55] : memref<9x128x128xbf16, #tpu.memory_space<vmem>>, vector<1x128x128xbf16>
    %53 = vector.shape_cast %52 : vector<1x128x128xbf16> to vector<128x128xbf16>
    %cst_56 = arith.constant dense<0.000000e+00> : vector<120x128xf32>
    %54 = tpu.matmul %51, %53, %cst_56 {dimension_numbers = #tpu.dot_dimension_numbers<[1], [0], [0], [1], [0, 0, 1, 1], [], []>} : vector<120x128xbf16>, vector<128x128xbf16>, vector<120x128xf32> -> vector<120x128xf32>
    %55 = arith.addf %50, %54 : vector<120x128xf32>
    %c0_57 = arith.constant 0 : index
    %c0_58 = arith.constant 0 : index
    %56 = vector.load %arg12[%c0_57, %c0_58] : memref<120x128xf32, #tpu.memory_space<vmem>>, vector<120x128xf32>
    tpu.vector_store %arg12[%c0_57, %c0_58], %55 {strides = array<i32>} : memref<120x128xf32, #tpu.memory_space<vmem>>, vector<120x128xf32>,
    %c2 = arith.constant 2 : index
    %c0_59 = arith.constant 0 : index
    %57 = vector.load %arg11[%c2, %c0_59] : memref<160x128xbf16, #tpu.memory_space<vmem>>, vector<152x128xbf16>
    %c0_60 = arith.constant 0 : index
    %c0_61 = arith.constant 0 : index
    %58 = vector.load %arg12[%c0_60, %c0_61] : memref<120x128xf32, #tpu.memory_space<vmem>>, vector<120x128xf32>
    %59 = vector.extract_strided_slice %57 {offsets = [0, 0], sizes = [120, 128], strides = [1, 1]} : vector<152x128xbf16> to vector<120x128xbf16>
    %c2_62 = arith.constant 2 : index
    %c0_63 = arith.constant 0 : index
    %c0_64 = arith.constant 0 : index
    %60 = vector.load %arg4[%c2_62, %c0_63, %c0_64] : memref<9x128x128xbf16, #tpu.memory_space<vmem>>, vector<1x128x128xbf16>
    %61 = vector.shape_cast %60 : vector<1x128x128xbf16> to vector<128x128xbf16>
    %cst_65 = arith.constant dense<0.000000e+00> : vector<120x128xf32>
    %62 = tpu.matmul %59, %61, %cst_65 {dimension_numbers = #tpu.dot_dimension_numbers<[1], [0], [0], [1], [0, 0, 1, 1], [], []>} : vector<120x128xbf16>, vector<128x128xbf16>, vector<120x128xf32> -> vector<120x128xf32>
    %63 = arith.addf %58, %62 : vector<120x128xf32>
    %c0_66 = arith.constant 0 : index
    %c0_67 = arith.constant 0 : index
    %64 = vector.load %arg12[%c0_66, %c0_67] : memref<120x128xf32, #tpu.memory_space<vmem>>, vector<120x128xf32>
    tpu.vector_store %arg12[%c0_66, %c0_67], %63 {strides = array<i32>} : memref<120x128xf32, #tpu.memory_space<vmem>>, vector<120x128xf32>,
    %c0_68 = arith.constant 0 : index
    %c0_69 = arith.constant 0 : index
    %65 = vector.load %arg12[%c0_68, %c0_69] : memref<120x128xf32, #tpu.memory_space<vmem>>, vector<120x128xf32>
    %66 = vector.extract_strided_slice %57 {offsets = [16, 0], sizes = [120, 128], strides = [1, 1]} : vector<152x128xbf16> to vector<120x128xbf16>
    %c5 = arith.constant 5 : index
    %c0_70 = arith.constant 0 : index
    %c0_71 = arith.constant 0 : index
    %67 = vector.load %arg4[%c5, %c0_70, %c0_71] : memref<9x128x128xbf16, #tpu.memory_space<vmem>>, vector<1x128x128xbf16>
    %68 = vector.shape_cast %67 : vector<1x128x128xbf16> to vector<128x128xbf16>
    %cst_72 = arith.constant dense<0.000000e+00> : vector<120x128xf32>
    %69 = tpu.matmul %66, %68, %cst_72 {dimension_numbers = #tpu.dot_dimension_numbers<[1], [0], [0], [1], [0, 0, 1, 1], [], []>} : vector<120x128xbf16>, vector<128x128xbf16>, vector<120x128xf32> -> vector<120x128xf32>
    %70 = arith.addf %65, %69 : vector<120x128xf32>
    %c0_73 = arith.constant 0 : index
    %c0_74 = arith.constant 0 : index
    %71 = vector.load %arg12[%c0_73, %c0_74] : memref<120x128xf32, #tpu.memory_space<vmem>>, vector<120x128xf32>
    tpu.vector_store %arg12[%c0_73, %c0_74], %70 {strides = array<i32>} : memref<120x128xf32, #tpu.memory_space<vmem>>, vector<120x128xf32>,
    %c0_75 = arith.constant 0 : index
    %c0_76 = arith.constant 0 : index
    %72 = vector.load %arg12[%c0_75, %c0_76] : memref<120x128xf32, #tpu.memory_space<vmem>>, vector<120x128xf32>
    %73 = vector.extract_strided_slice %57 {offsets = [32, 0], sizes = [120, 128], strides = [1, 1]} : vector<152x128xbf16> to vector<120x128xbf16>
    %c8 = arith.constant 8 : index
    %c0_77 = arith.constant 0 : index
    %c0_78 = arith.constant 0 : index
    %74 = vector.load %arg4[%c8, %c0_77, %c0_78] : memref<9x128x128xbf16, #tpu.memory_space<vmem>>, vector<1x128x128xbf16>
    %75 = vector.shape_cast %74 : vector<1x128x128xbf16> to vector<128x128xbf16>
    %cst_79 = arith.constant dense<0.000000e+00> : vector<120x128xf32>
    %76 = tpu.matmul %73, %75, %cst_79 {dimension_numbers = #tpu.dot_dimension_numbers<[1], [0], [0], [1], [0, 0, 1, 1], [], []>} : vector<120x128xbf16>, vector<128x128xbf16>, vector<120x128xf32> -> vector<120x128xf32>
    %77 = arith.addf %72, %76 : vector<120x128xf32>
    %c0_80 = arith.constant 0 : index
    %c0_81 = arith.constant 0 : index
    %78 = vector.load %arg12[%c0_80, %c0_81] : memref<120x128xf32, #tpu.memory_space<vmem>>, vector<120x128xf32>
    tpu.vector_store %arg12[%c0_80, %c0_81], %77 {strides = array<i32>} : memref<120x128xf32, #tpu.memory_space<vmem>>, vector<120x128xf32>,
    %c0_82 = arith.constant 0 : index
    %c0_83 = arith.constant 0 : index
    %79 = vector.load %arg12[%c0_82, %c0_83] : memref<120x128xf32, #tpu.memory_space<vmem>>, vector<120x128xf32>
    %c0_84 = arith.constant 0 : index
    %c0_85 = arith.constant 0 : index
    %80 = vector.load %arg5[%c0_84, %c0_85] : memref<1x128xf32, #tpu.memory_space<vmem>>, vector<1x128xf32>
    %81 = vector.broadcast %80 : vector<1x128xf32> to vector<120x128xf32>
    %82 = arith.addf %79, %81 : vector<120x128xf32>
    %cst_86 = arith.constant 0.000000e+00 : f32
    %83 = vector.broadcast %cst_86 : f32 to vector<120x128xf32>
    %84 = arith.maximumf %82, %83 : vector<120x128xf32>
    %85 = vector.extract_strided_slice %84 {offsets = [0, 0], sizes = [103, 128], strides = [1, 1]} : vector<120x128xf32> to vector<103x128xf32>
    %86 = vector.extract_strided_slice %84 {offsets = [1, 0], sizes = [103, 128], strides = [1, 1]} : vector<120x128xf32> to vector<103x128xf32>
    %87 = arith.maximumf %85, %86 : vector<103x128xf32>
    %88 = vector.extract_strided_slice %84 {offsets = [16, 0], sizes = [103, 128], strides = [1, 1]} : vector<120x128xf32> to vector<103x128xf32>
    %89 = vector.extract_strided_slice %84 {offsets = [17, 0], sizes = [103, 128], strides = [1, 1]} : vector<120x128xf32> to vector<103x128xf32>
    %90 = arith.maximumf %88, %89 : vector<103x128xf32>
    %91 = arith.maximumf %87, %90 : vector<103x128xf32>
    %92 = arith.truncf %91 : vector<103x128xf32> to vector<103x128xbf16>
    %93 = vector.extract_strided_slice %92 {offsets = [0, 0], sizes = [99, 128], strides = [1, 1]} : vector<103x128xbf16> to vector<99x128xbf16>
    %94 = vector.extract_strided_slice %93 {offsets = [0, 0], sizes = [35, 128], strides = [1, 1]} : vector<99x128xbf16> to vector<35x128xbf16>
    %c0_87 = arith.constant 0 : index
    %c0_88 = arith.constant 0 : index
    %c0_89 = arith.constant 0 : index
    %95 = vector.load %arg6[%c0_87, %c0_88, %c0_89] : memref<9x128x128xbf16, #tpu.memory_space<vmem>>, vector<1x128x128xbf16>
    %96 = vector.shape_cast %95 : vector<1x128x128xbf16> to vector<128x128xbf16>
    %cst_90 = arith.constant dense<0.000000e+00> : vector<35x128xf32>
    %97 = tpu.matmul %94, %96, %cst_90 {dimension_numbers = #tpu.dot_dimension_numbers<[1], [0], [0], [1], [0, 0, 1, 1], [], []>} : vector<35x128xbf16>, vector<128x128xbf16>, vector<35x128xf32> -> vector<35x128xf32>
    %98 = vector.extract_strided_slice %93 {offsets = [32, 0], sizes = [35, 128], strides = [1, 1]} : vector<99x128xbf16> to vector<35x128xbf16>
    %c3_91 = arith.constant 3 : index
    %c0_92 = arith.constant 0 : index
    %c0_93 = arith.constant 0 : index
    %99 = vector.load %arg6[%c3_91, %c0_92, %c0_93] : memref<9x128x128xbf16, #tpu.memory_space<vmem>>, vector<1x128x128xbf16>
    %100 = vector.shape_cast %99 : vector<1x128x128xbf16> to vector<128x128xbf16>
    %cst_94 = arith.constant dense<0.000000e+00> : vector<35x128xf32>
    %101 = tpu.matmul %98, %100, %cst_94 {dimension_numbers = #tpu.dot_dimension_numbers<[1], [0], [0], [1], [0, 0, 1, 1], [], []>} : vector<35x128xbf16>, vector<128x128xbf16>, vector<35x128xf32> -> vector<35x128xf32>
    %102 = arith.addf %97, %101 : vector<35x128xf32>
    %103 = vector.extract_strided_slice %93 {offsets = [64, 0], sizes = [35, 128], strides = [1, 1]} : vector<99x128xbf16> to vector<35x128xbf16>
    %c6_95 = arith.constant 6 : index
    %c0_96 = arith.constant 0 : index
    %c0_97 = arith.constant 0 : index
    %104 = vector.load %arg6[%c6_95, %c0_96, %c0_97] : memref<9x128x128xbf16, #tpu.memory_space<vmem>>, vector<1x128x128xbf16>
    %105 = vector.shape_cast %104 : vector<1x128x128xbf16> to vector<128x128xbf16>
    %cst_98 = arith.constant dense<0.000000e+00> : vector<35x128xf32>
    %106 = tpu.matmul %103, %105, %cst_98 {dimension_numbers = #tpu.dot_dimension_numbers<[1], [0], [0], [1], [0, 0, 1, 1], [], []>} : vector<35x128xbf16>, vector<128x128xbf16>, vector<35x128xf32> -> vector<35x128xf32>
    %107 = arith.addf %102, %106 : vector<35x128xf32>
    %108 = vector.extract_strided_slice %92 {offsets = [2, 0], sizes = [99, 128], strides = [1, 1]} : vector<103x128xbf16> to vector<99x128xbf16>
    %109 = vector.extract_strided_slice %108 {offsets = [0, 0], sizes = [35, 128], strides = [1, 1]} : vector<99x128xbf16> to vector<35x128xbf16>
    %c1_99 = arith.constant 1 : index
    %c0_100 = arith.constant 0 : index
    %c0_101 = arith.constant 0 : index
    %110 = vector.load %arg6[%c1_99, %c0_100, %c0_101] : memref<9x128x128xbf16, #tpu.memory_space<vmem>>, vector<1x128x128xbf16>
    %111 = vector.shape_cast %110 : vector<1x128x128xbf16> to vector<128x128xbf16>
    %cst_102 = arith.constant dense<0.000000e+00> : vector<35x128xf32>
    %112 = tpu.matmul %109, %111, %cst_102 {dimension_numbers = #tpu.dot_dimension_numbers<[1], [0], [0], [1], [0, 0, 1, 1], [], []>} : vector<35x128xbf16>, vector<128x128xbf16>, vector<35x128xf32> -> vector<35x128xf32>
    %113 = vector.extract_strided_slice %108 {offsets = [32, 0], sizes = [35, 128], strides = [1, 1]} : vector<99x128xbf16> to vector<35x128xbf16>
    %c4_103 = arith.constant 4 : index
    %c0_104 = arith.constant 0 : index
    %c0_105 = arith.constant 0 : index
    %114 = vector.load %arg6[%c4_103, %c0_104, %c0_105] : memref<9x128x128xbf16, #tpu.memory_space<vmem>>, vector<1x128x128xbf16>
    %115 = vector.shape_cast %114 : vector<1x128x128xbf16> to vector<128x128xbf16>
    %cst_106 = arith.constant dense<0.000000e+00> : vector<35x128xf32>
    %116 = tpu.matmul %113, %115, %cst_106 {dimension_numbers = #tpu.dot_dimension_numbers<[1], [0], [0], [1], [0, 0, 1, 1], [], []>} : vector<35x128xbf16>, vector<128x128xbf16>, vector<35x128xf32> -> vector<35x128xf32>
    %117 = arith.addf %112, %116 : vector<35x128xf32>
    %118 = vector.extract_strided_slice %108 {offsets = [64, 0], sizes = [35, 128], strides = [1, 1]} : vector<99x128xbf16> to vector<35x128xbf16>
    %c7_107 = arith.constant 7 : index
    %c0_108 = arith.constant 0 : index
    %c0_109 = arith.constant 0 : index
    %119 = vector.load %arg6[%c7_107, %c0_108, %c0_109] : memref<9x128x128xbf16, #tpu.memory_space<vmem>>, vector<1x128x128xbf16>
    %120 = vector.shape_cast %119 : vector<1x128x128xbf16> to vector<128x128xbf16>
    %cst_110 = arith.constant dense<0.000000e+00> : vector<35x128xf32>
    %121 = tpu.matmul %118, %120, %cst_110 {dimension_numbers = #tpu.dot_dimension_numbers<[1], [0], [0], [1], [0, 0, 1, 1], [], []>} : vector<35x128xbf16>, vector<128x128xbf16>, vector<35x128xf32> -> vector<35x128xf32>
    %122 = arith.addf %117, %121 : vector<35x128xf32>
    %123 = vector.extract_strided_slice %92 {offsets = [4, 0], sizes = [99, 128], strides = [1, 1]} : vector<103x128xbf16> to vector<99x128xbf16>
    %124 = vector.extract_strided_slice %123 {offsets = [0, 0], sizes = [35, 128], strides = [1, 1]} : vector<99x128xbf16> to vector<35x128xbf16>
    %c2_111 = arith.constant 2 : index
    %c0_112 = arith.constant 0 : index
    %c0_113 = arith.constant 0 : index
    %125 = vector.load %arg6[%c2_111, %c0_112, %c0_113] : memref<9x128x128xbf16, #tpu.memory_space<vmem>>, vector<1x128x128xbf16>
    %126 = vector.shape_cast %125 : vector<1x128x128xbf16> to vector<128x128xbf16>
    %cst_114 = arith.constant dense<0.000000e+00> : vector<35x128xf32>
    %127 = tpu.matmul %124, %126, %cst_114 {dimension_numbers = #tpu.dot_dimension_numbers<[1], [0], [0], [1], [0, 0, 1, 1], [], []>} : vector<35x128xbf16>, vector<128x128xbf16>, vector<35x128xf32> -> vector<35x128xf32>
    %128 = vector.extract_strided_slice %123 {offsets = [32, 0], sizes = [35, 128], strides = [1, 1]} : vector<99x128xbf16> to vector<35x128xbf16>
    %c5_115 = arith.constant 5 : index
    %c0_116 = arith.constant 0 : index
    %c0_117 = arith.constant 0 : index
    %129 = vector.load %arg6[%c5_115, %c0_116, %c0_117] : memref<9x128x128xbf16, #tpu.memory_space<vmem>>, vector<1x128x128xbf16>
    %130 = vector.shape_cast %129 : vector<1x128x128xbf16> to vector<128x128xbf16>
    %cst_118 = arith.constant dense<0.000000e+00> : vector<35x128xf32>
    %131 = tpu.matmul %128, %130, %cst_118 {dimension_numbers = #tpu.dot_dimension_numbers<[1], [0], [0], [1], [0, 0, 1, 1], [], []>} : vector<35x128xbf16>, vector<128x128xbf16>, vector<35x128xf32> -> vector<35x128xf32>
    %132 = arith.addf %127, %131 : vector<35x128xf32>
    %133 = vector.extract_strided_slice %123 {offsets = [64, 0], sizes = [35, 128], strides = [1, 1]} : vector<99x128xbf16> to vector<35x128xbf16>
    %c8_119 = arith.constant 8 : index
    %c0_120 = arith.constant 0 : index
    %c0_121 = arith.constant 0 : index
    %134 = vector.load %arg6[%c8_119, %c0_120, %c0_121] : memref<9x128x128xbf16, #tpu.memory_space<vmem>>, vector<1x128x128xbf16>
    %135 = vector.shape_cast %134 : vector<1x128x128xbf16> to vector<128x128xbf16>
    %cst_122 = arith.constant dense<0.000000e+00> : vector<35x128xf32>
    %136 = tpu.matmul %133, %135, %cst_122 {dimension_numbers = #tpu.dot_dimension_numbers<[1], [0], [0], [1], [0, 0, 1, 1], [], []>} : vector<35x128xbf16>, vector<128x128xbf16>, vector<35x128xf32> -> vector<35x128xf32>
    %137 = arith.addf %132, %136 : vector<35x128xf32>
    %138 = arith.addf %107, %122 : vector<35x128xf32>
    %139 = arith.addf %138, %137 : vector<35x128xf32>
    %c0_123 = arith.constant 0 : index
    %c0_124 = arith.constant 0 : index
    %140 = vector.load %arg7[%c0_123, %c0_124] : memref<1x128xf32, #tpu.memory_space<vmem>>, vector<1x128xf32>
    %141 = vector.broadcast %140 : vector<1x128xf32> to vector<35x128xf32>
    %142 = arith.addf %139, %141 : vector<35x128xf32>
    %cst_125 = arith.constant 0.000000e+00 : f32
    %143 = vector.broadcast %cst_125 : f32 to vector<35x128xf32>
    %144 = arith.maximumf %142, %143 : vector<35x128xf32>
    %cst_126 = arith.constant 0.000000e+00 : f32
    %145 = vector.broadcast %cst_126 : f32 to vector<1x128xf32>
    %146 = vector.extract_strided_slice %144 {offsets = [0, 0], sizes = [1, 128], strides = [1, 1]} : vector<35x128xf32> to vector<1x128xf32>
    %147 = vector.extract_strided_slice %144 {offsets = [2, 0], sizes = [1, 128], strides = [1, 1]} : vector<35x128xf32> to vector<1x128xf32>
    %148 = arith.maximumf %146, %147 : vector<1x128xf32>
    %149 = vector.extract_strided_slice %144 {offsets = [32, 0], sizes = [1, 128], strides = [1, 1]} : vector<35x128xf32> to vector<1x128xf32>
    %150 = arith.maximumf %148, %149 : vector<1x128xf32>
    %151 = vector.extract_strided_slice %144 {offsets = [34, 0], sizes = [1, 128], strides = [1, 1]} : vector<35x128xf32> to vector<1x128xf32>
    %152 = arith.maximumf %150, %151 : vector<1x128xf32>
    %153 = arith.addf %145, %152 : vector<1x128xf32>
    %cst_127 = arith.constant 1.000000e+00 : f32
    %154 = vector.broadcast %cst_127 : f32 to vector<1x128xf32>
    %155 = arith.mulf %153, %154 : vector<1x128xf32>
    %156 = arith.truncf %155 : vector<1x128xf32> to vector<1x128xbf16>
    %c0_128 = arith.constant 0 : index
    %c0_129 = arith.constant 0 : index
    %157 = vector.load %arg8[%c0_128, %c0_129] : memref<128x128xbf16, #tpu.memory_space<vmem>>, vector<128x128xbf16>
    %cst_130 = arith.constant dense<0.000000e+00> : vector<1x128xf32>
    %158 = tpu.matmul %156, %157, %cst_130 {dimension_numbers = #tpu.dot_dimension_numbers<[1], [0], [0], [1], [0, 0, 1, 1], [], []>} : vector<1x128xbf16>, vector<128x128xbf16>, vector<1x128xf32> -> vector<1x128xf32>
    %c0_131 = arith.constant 0 : index
    %c0_132 = arith.constant 0 : index
    %159 = vector.load %arg9[%c0_131, %c0_132] : memref<1x128xf32, #tpu.memory_space<vmem>>, vector<1x128xf32>
    %160 = arith.addf %158, %159 : vector<1x128xf32>
    %c0_133 = arith.constant 0 : index
    %c0_134 = arith.constant 0 : index
    %c0_135 = arith.constant 0 : index
    %161 = vector.load %arg10[%c0_133, %c0_134, %c0_135] : memref<1x1x128xf32, #tpu.memory_space<vmem>>, vector<1x1x128xf32>
    %162 = vector.shape_cast %161 : vector<1x1x128xf32> to vector<1x128xf32>
    %163 = vector.shape_cast %160 : vector<1x128xf32> to vector<1x1x128xf32>
    tpu.vector_store %arg10[%c0_133, %c0_134, %c0_135], %163 {strides = array<i32>} : memref<1x1x128xf32, #tpu.memory_space<vmem>>, vector<1x1x128xf32>,
    return
  }
  func.func @transform_0(%arg0: i32) -> (i32, i32, i32) {
    %c0_i32 = arith.constant 0 : i32
    %c0_i32_0 = arith.constant 0 : i32
    %c0_i32_1 = arith.constant 0 : i32
    return %arg0, %c0_i32, %c0_i32_0 : i32, i32, i32
  }
  func.func @transform_1(%arg0: i32) -> (i32, i32) {
    %c0_i32 = arith.constant 0 : i32
    %c0_i32_0 = arith.constant 0 : i32
    %c0_i32_1 = arith.constant 0 : i32
    return %c0_i32, %c0_i32_0 : i32, i32
  }
  func.func @transform_2(%arg0: i32) -> (i32, i32) {
    %c0_i32 = arith.constant 0 : i32
    %c0_i32_0 = arith.constant 0 : i32
    %c0_i32_1 = arith.constant 0 : i32
    return %c0_i32, %c0_i32_0 : i32, i32
  }
  func.func @transform_3(%arg0: i32) -> (i32, i32, i32) {
    %c0_i32 = arith.constant 0 : i32
    %c0_i32_0 = arith.constant 0 : i32
    %c0_i32_1 = arith.constant 0 : i32
    %c0_i32_2 = arith.constant 0 : i32
    return %c0_i32, %c0_i32_0, %c0_i32_1 : i32, i32, i32
  }
  func.func @transform_4(%arg0: i32) -> (i32, i32) {
    %c0_i32 = arith.constant 0 : i32
    %c0_i32_0 = arith.constant 0 : i32
    %c0_i32_1 = arith.constant 0 : i32
    return %c0_i32, %c0_i32_0 : i32, i32
  }
  func.func @transform_5(%arg0: i32) -> (i32, i32, i32) {
    %c0_i32 = arith.constant 0 : i32
    %c0_i32_0 = arith.constant 0 : i32
    %c0_i32_1 = arith.constant 0 : i32
    %c0_i32_2 = arith.constant 0 : i32
    return %c0_i32, %c0_i32_0, %c0_i32_1 : i32, i32, i32
  }
  func.func @transform_6(%arg0: i32) -> (i32, i32) {
    %c0_i32 = arith.constant 0 : i32
    %c0_i32_0 = arith.constant 0 : i32
    %c0_i32_1 = arith.constant 0 : i32
    return %c0_i32, %c0_i32_0 : i32, i32
  }
  func.func @transform_7(%arg0: i32) -> (i32, i32) {
    %c0_i32 = arith.constant 0 : i32
    %c0_i32_0 = arith.constant 0 : i32
    %c0_i32_1 = arith.constant 0 : i32
    return %c0_i32, %c0_i32_0 : i32, i32
  }
  func.func @transform_8(%arg0: i32) -> (i32, i32) {
    %c0_i32 = arith.constant 0 : i32
    %c0_i32_0 = arith.constant 0 : i32
    %c0_i32_1 = arith.constant 0 : i32
    return %c0_i32, %c0_i32_0 : i32, i32
  }
  func.func @transform_9(%arg0: i32) -> (i32, i32, i32) {
    %c0_i32 = arith.constant 0 : i32
    %c0_i32_0 = arith.constant 0 : i32
    %c0_i32_1 = arith.constant 0 : i32
    return %arg0, %c0_i32, %c0_i32_0 : i32, i32, i32
  }
}

</mosaic_0001>

<bundles_post_ra>
// kernel: base_model_forward.1
= control target key start
LH: loop header
LB: loop body
LE: loop exit
PB: predicated region body
PF: predicated region fallthrough
CT: control target
= control target key end

     0   :  { %14 = vsyncpa [#allocation5], 0  ;;  %s7667_s0 = inlined_call_operand.vmem [shape: bf16[2,160,256], index: 0, kind: input, shape index: {}]   ;;  %s7668_s1 = inlined_call_operand.vmem [shape: bf16[256,128], index: 1, kind: input, shape index: {}]   ;;  %s7669_s2 = inlined_call_operand.vmem [shape: f32[1,128], index: 2, kind: input, shape index: {}]   ;;  %s7670_s3 = inlined_call_operand.vmem [shape: bf16[9,128,128], index: 3, kind: input, shape index: {}]   ;;  %s7671_s4 = inlined_call_operand.vmem [shape: f32[1,128], index: 4, kind: input, shape index: {}]   ;;  %s7672_s5 = inlined_call_operand.vmem [shape: bf16[9,128,128], index: 5, kind: input, shape index: {}]   ;;  %s7673_s6 = inlined_call_operand.vmem [shape: f32[1,128], index: 6, kind: input, shape index: {}]   ;;  %s7674_s7 = inlined_call_operand.vmem [shape: bf16[128,128], index: 7, kind: input, shape index: {}]   ;;  %s7675_s8 = inlined_call_operand.vmem [shape: f32[1,128], index: 8, kind: input, shape index: {}]   ;;  %s7676_s9 = inlined_call_operand.hbm [shape: f32[2,1,128], index: 9, kind: output, shape index: {}]  }
   0x1   :  { %16 = vsyncpa [#allocation5 + $0x1], 0  ;;  %s6361_s30 = smov 0   ;;  %s6363_s10 = smov 0  }
   0x2   :  { %s6365_s11 = smov 0   ;;  %s6367_s12 = smov 0  }
   0x3 LB: > { %s6382_s13 = sadd.s32 4294967295, %s6306_s12   ;;  %s4500_s14 = sadd.s32 4294967294, %s6306_s12   ;;  %s6306_s12 = sphi %s6367_s12, %s7695_s12   ;;  %s6302_s11 = sphi %s6365_s11, %s7694_s11   ;;  %s6298_s10 = sphi %s6363_s10, %s7693_s10   ;;  %s6294_s30 = sphi %s6361_s30, %s7692_s30  }
   0x4   : > { %s6386_s15 = sadd.s32 1, %s6306_s12   ;;  %s223_s16 = sadd.s32 1, %s6302_s11 }
   0x5   : > { %s220_s17 = ssub.s32 %s6306_s12, %s6386_s15  ;;  %p233_p0 = scmp.ne.s32.totalorder %s6302_s11, %s6298_s10 }
   0x6   : > { %p221_p1 = scmp.eq.s32.totalorder %s220_s17, 0  ;;  %p234_p2 = scmp.eq.s32.totalorder %s6382_s13, 1 }
   0x7   : > { %p239_p3 = scmp.ne.s32.totalorder %s6298_s10, %s6294_s30  ;;  %p240_p4 = scmp.eq.s32.totalorder %s4500_s14, 1 }
   0x8   : > { %s6397_s18 = scalar_select %p221_p1, %s6302_s11, %s223_s16  }
   0x9   : > { %p6399_p5 = por %p234_p2, %p233_p0  ;;  %p6403_p6 = por %p240_p4, %p239_p3 }
   0xa   : > { %p4503_p7 = scmp.ge.s32.totalorder %s6306_s12, 1  ;;  %p290_p8 = scmp.lt.s32.totalorder %s6306_s12, 3 }
   0xc   : > { %p291_p9 = pnand %p4503_p7, %p290_p8 }
   0xe   : > { %294 = sbr.rel (%p291_p9) target bundleno = 1247 (0x4df), region = 56 }
  0x13   : > { %v6016_v0 = vld [vmem:[%s7668_s1 + $0x78] sm:$0xff]   ;;  %v6018_v2 = vld [vmem:[%s7668_s1 + $0x70] sm:$0xff]   ;;  %p325_p10 = scmp.lt.s32.totalorder %s6382_s13, 1  ;;  %v6020_v4 = vld [vmem:[%s7668_s1 + $0x68] sm:$0xff]   ;;  %vm1624_vm0 = vsmask.f32 7424 }
  0x14   : > { %v6017_v1 = vld [vmem:[%s7668_s1 + $0x38] sm:$0xff]   ;;  %5086 = vmatprep.subr.bf16.mxu0 %v6016_v0  ;;  %v6019_v3 = vld [vmem:[%s7668_s1 + $0x30] sm:$0xff]   ;;  %v6021_v5 = vld [vmem:[%s7668_s1 + $0x28] sm:$0xff]   ;;  %vm2404_vm1 = vcmask 1046528   ;;  %vm6309_vm2 = vmmov 0   ;;  %vm3955_vm3 = vcmask 1045504  }
  0x15   : > { %5087 = vmatpush3.bf16.msra.mxu0 %v6017_v1  ;;  %s326_s16 = scalar_select %p325_p10, %s6382_s13, 1  ;;  %v6022_v6 = vld [vmem:[%s7668_s1 + $0x60] sm:$0xff]   ;;  %v6024_v8 = vld [vmem:[%s7668_s1 + $0x58] sm:$0xff]   ;;  %v6026_v10 = vld [vmem:[%s7668_s1 + $0x50] sm:$0xff]  }
  0x16   : > { %5088 = vmatprep.subr.bf16.mxu0 %v6018_v2  ;;  %v6023_v7 = vld [vmem:[%s7668_s1 + $0x20] sm:$0xff]   ;;  %v6025_v9 = vld [vmem:[%s7668_s1 + $0x18] sm:$0xff]   ;;  %v6027_v12 = vld [vmem:[%s7668_s1 + $0x10] sm:$0xff]   ;;  %s5004_s25 = sshll.u32 %s6382_s13, 4  ;;  %s6310_s13 = smov [#allocation4]  }
  0x17   : > { %s5974_s24 = smul.u32 160, %s326_s16  ;;  %v6028_v13 = vld [vmem:[%s7668_s1 + $0x48] sm:$0xff]   ;;  %v6030_v15 = vld [vmem:[%s7668_s1 + $0x40] sm:$0xff]   ;;  %v6062_v35 = vld [vmem:[%s7670_s3 + $0x38] sm:$0xff]   ;;  %s7626_s29 = scalar_lea.hbm %s7676_s9, %s5004_s25 }
  0x18   : > { %v6029_v14 = vld [vmem:[%s7668_s1 + $0x8] sm:$0xff]   ;;  %v6031_v16 = vld [vmem:[%s7668_s1] sm:$0xff]   ;;  %5414 = vmatprep.subr.bf16.mxu1 %v6062_v35  ;;  %v6063_v37 = vld [vmem:[%s7670_s3 + $0x30] sm:$0xff]   ;;  %s6250_s22 = sshll.u32 %s6310_s13, 4  ;;  %s6251_s22 = int_to_ptr.vmem [resolvable:$false] %s6250_s22 }
  0x19   : > { %5089 = vmatpush3.bf16.msra.mxu0 %v6019_v3  ;;  %s6441_s17 = scalar_lea.vmem %s7667_s0, %s5974_s24  ;;  %5415 = vmatpush3.bf16.msra.mxu1 %v6062_v35  ;;  %v6064_v38 = vld [vmem:[%s7670_s3 + $0x28] sm:$0xff]   ;;  %v6065_v39 = vld [vmem:[%s7670_s3 + $0x20] sm:$0xff]   ;;  %v6066_v40 = vld [vmem:[%s7670_s3 + $0x78] sm:$0xff]   ;;  %s6252_s16 = scalar_lea.vmem %s6251_s22, 32 }
  0x1a   : > { %5090 = vmatprep.subr.bf16.mxu0 %v6020_v4  ;;  %v6034_v11 = vld [vmem:[%s6441_s17 + $0x4] ss:$8 sps:$4 sm:$0xff]   ;;  %v6032_v17 = vld [vmem:[%s6441_s17] ss:$8 sps:$4 sm:$0xff]   ;;  %v6035_v18 = vld [vmem:[%s6441_s17 + $0x14] ss:$8 sps:$4 sm:$0xff]   ;;  %5416 = vmatprep.subr.bf16.mxu1 %v6063_v37 }
  0x1b   : > { %618 = vmatprep.mubr.bf16.mxu0 %v6034_v11  ;;  %v6037_v19 = vld [vmem:[%s6441_s17 + $0x10] ss:$8 sps:$4 sm:$0xff]   ;;  %v6038_v20 = vld [vmem:[%s6441_s17 + $0x24] ss:$8 sps:$4 sm:$0xff]   ;;  %v6040_v21 = vld [vmem:[%s6441_s17 + $0x20] ss:$8 sps:$4 sm:$0xff]  }
  0x1c   : > { %v6041_v22 = vld [vmem:[%s6441_s17 + $0x34] ss:$8 sps:$4 sm:$0xff]   ;;  %v6043_v23 = vld [vmem:[%s6441_s17 + $0x30] ss:$8 sps:$4 sm:$0xff]   ;;  %v6044_v24 = vld [vmem:[%s6441_s17 + $0x44] ss:$8 sps:$4 sm:$0xff]  }
  0x1d   : > { %5091 = vmatpush3.bf16.msra.mxu0 %v6021_v5  ;;  %v6046_v25 = vld [vmem:[%s6441_s17 + $0x40] ss:$8 sps:$4 sm:$0xff]   ;;  %v6047_v26 = vld [vmem:[%s6441_s17 + $0x54] ss:$8 sps:$4 sm:$0xff]   ;;  %v6049_v27 = vld [vmem:[%s6441_s17 + $0x50] ss:$8 sps:$4 sm:$0xff]   ;;  %5417 = vmatpush3.bf16.msra.mxu1 %v6063_v37 }
  0x1e   : > { %5092 = vmatprep.subr.bf16.mxu0 %v6022_v6  ;;  %v6050_v28 = vld [vmem:[%s6441_s17 + $0x64] ss:$8 sps:$4 sm:$0xff]   ;;  %v6052_v29 = vld [vmem:[%s6441_s17 + $0x60] ss:$8 sps:$4 sm:$0xff]   ;;  %v6053_v30 = vld [vmem:[%s6441_s17 + $0x74] ss:$8 sps:$4 sm:$0xff]   ;;  %5418 = vmatprep.subr.bf16.mxu1 %v6064_v38 }
  0x1f   : > { %v6055_v31 = vld [vmem:[%s6441_s17 + $0x70] ss:$8 sps:$4 sm:$0xff]   ;;  %v6056_v32 = vld [vmem:[%s6441_s17 + $0x84] ss:$8 sps:$4 sm:$0xff]   ;;  %v6058_v33 = vld [vmem:[%s6441_s17 + $0x80] ss:$8 sps:$4 sm:$0xff]  }
  0x20   : > { %v6059_v34 = vld [vmem:[%s6441_s17 + $0x94] ss:$8 sps:$4 sm:$0xff]   ;;  %v6061_v36 = vld [vmem:[%s6441_s17 + $0x90] ss:$8 sps:$4 sm:$0xff]   ;;  %v6070_v44 = vld [vmem:[%s7670_s3 + $0x68] sm:$0xff]   ;;  %s323_s17 = sand.u32 1, %s6298_s10  }
  0x21   : > { %5093 = vmatpush3.bf16.msra.mxu0 %v6023_v7  ;;  %5419 = vmatpush3.bf16.msra.mxu1 %v6064_v38  ;;  %v6067_v41 = vld [vmem:[%s7670_s3 + $0x18] sm:$0xff]   ;;  %v6068_v42 = vld [vmem:[%s7670_s3 + $0x70] sm:$0xff]   ;;  %v6071_v45 = vld [vmem:[%s7670_s3 + $0x8] sm:$0xff]   ;;  %s324_s26 = scalar_lea.vmem [#allocation4], %s323_s17  ;;  %s4433_s14 = scalar_lea.sflag [#allocation5], %s323_s17 }
  0x22   : > { %5094 = vmatprep.subr.bf16.mxu0 %v6024_v8  ;;  %5420 = vmatprep.subr.bf16.mxu1 %v6065_v39  ;;  %v6069_v43 = vld [vmem:[%s7670_s3 + $0x10] sm:$0xff]   ;;  %v6073_v46 = vld [vmem:[%s7670_s3 + $0x60] sm:$0xff]   ;;  %v6075_v48 = vld [vmem:[%s7670_s3 + $0x58] sm:$0xff]   ;;  %s4445_s24 = sshll.u32 %s324_s26, 4  ;;  %s7628_s24 = int_to_ptr.vmem [resolvable:$true] %s4445_s24 }
  0x23   : > { %v6074_v47 = vld [vmem:[%s7670_s3] sm:$0xff]   ;;  %v6077_v49 = vld [vmem:[%s7670_s3 + $0x50] sm:$0xff]   ;;  %v6078_v50 = vld [vmem:[%s7670_s3 + $0x48] sm:$0xff]   ;;  %s6246_s21 = scalar_lea.vmem %s7628_s24, 16  ;;  %p6253_p0 = scmp.lt.s32.totalorder %s7628_s24, %s6251_s22 }
  0x24   : > { %v6082_v51 = vld [vmem:[%s7670_s3 + $0x40] sm:$0xff]   ;;  %v6086_v52 = vld [vmem:[%s7670_s3 + $0xf8] sm:$0xff]   ;;  %p6247_p11 = scmp.ne.s32.totalorder %s7628_s24, %s6246_s21  ;;  %p6254_p1 = scmp.lt.s32.totalorder %s6252_s16, %s6246_s21 }
  0x25   : > { %5095 = vmatpush3.bf16.msra.mxu0 %v6025_v9  ;;  %5421 = vmatpush3.bf16.msra.mxu1 %v6065_v39  ;;  %v6538_v53 = vld [vmem:[%s7670_s3 + $0x1f8] sm:$0xff]   ;;  %v6544_v57 = vld [vmem:[%s7669_s2] ss:$0 sm:$0xff] }
  0x26   : > { %5096 = vmatprep.subr.bf16.mxu0 %v6026_v10  ;;  %5422 = vmatprep.subr.bf16.mxu1 %v6067_v41  ;;  %p6248_p12 = pnand %p6247_p11, %p6399_p5  ;;  %p6255_p2 = por %p6254_p1, %p6253_p0 }
  0x28   : > { %p6249_p13 = pneg %p6248_p12 }
  0x29   : > { %5097 = vmatpush3.bf16.msra.mxu0 %v6027_v12  ;;  %5423 = vmatpush3.bf16.msra.mxu1 %v6067_v41 }
  0x2a   : > { %5098 = vmatprep.subr.bf16.mxu0 %v6028_v13  ;;  %5424 = vmatprep.subr.bf16.mxu1 %v6069_v43  ;;  %p6256_p3 = pnand %p6255_p2, %p6249_p13 }
  0x2d   : > { %5099 = vmatpush3.bf16.msra.mxu0 %v6029_v14  ;;  %5425 = vmatpush3.bf16.msra.mxu1 %v6069_v43 }
  0x2e   : > { %5100 = vmatprep.subr.bf16.mxu0 %v6030_v15  ;;  %5426 = vmatprep.subr.bf16.mxu1 %v6071_v45 }
  0x31   : > { %5101 = vmatpush3.bf16.msra.mxu0 %v6031_v16  ;;  %5427 = vmatpush3.bf16.msra.mxu1 %v6071_v45 }
  0x32   : > { %5510 = vmatprep.subr.bf16.mxu0 %v6066_v40  ;;  %5428 = vmatprep.subr.bf16.mxu1 %v6074_v47 }
  0x34   : > { %619 = vmatmul.mubr.bf16.vlgmr.msra.gmra.mxu0 %v6032_v17 }
  0x35   : > { %626 = vmatprep.mubr.bf16.mxu0 %v6035_v18  ;;  %5511 = vmatpush3.bf16.msra.mxu0 %v6066_v40 }
  0x36   : > { %5512 = vmatprep.subr.bf16.mxu0 %v6068_v42  ;;  %5429 = vmatpush3.bf16.msra.mxu1 %v6074_v47 }
  0x37   : > { %5446 = vmatprep.subr.bf16.mxu1 %v6086_v52 }
  0x39   : > { %5513 = vmatpush3.bf16.msra.mxu0 %v6068_v42 }
  0x3a   : > { %5514 = vmatprep.subr.bf16.mxu0 %v6070_v44 }
  0x3c   : > { %627 = vmatmul.mubr.bf16.gmra.mxu0 %v6037_v19 }
  0x3d   : > { %634 = vmatprep.mubr.bf16.mxu0 %v6038_v20  ;;  %5515 = vmatpush3.bf16.msra.mxu0 %v6070_v44  ;;  %v6091_v44 = vld [vmem:[%s7670_s3 + $0xe8] sm:$0xff]  }
  0x3e   : > { %5516 = vmatprep.subr.bf16.mxu0 %v6073_v46 }
  0x41   : > { %5517 = vmatpush3.bf16.msra.mxu0 %v6073_v46 }
  0x42   : > { %5518 = vmatprep.subr.bf16.mxu0 %v6075_v48 }
  0x44   : > { %635 = vmatmul.mubr.bf16.gmra.mxu0 %v6040_v21 }
  0x45   : > { %642 = vmatprep.mubr.bf16.mxu0 %v6041_v22  ;;  %5519 = vmatpush3.bf16.msra.mxu0 %v6075_v48 }
  0x46   : > { %5520 = vmatprep.subr.bf16.mxu0 %v6077_v49 }
  0x49   : > { %5521 = vmatpush3.bf16.msra.mxu0 %v6077_v49 }
  0x4a   : > { %5522 = vmatprep.subr.bf16.mxu0 %v6078_v50 }
  0x4c   : > { %643 = vmatmul.mubr.bf16.gmra.mxu0 %v6043_v23 }
  0x4d   : > { %650 = vmatprep.mubr.bf16.mxu0 %v6044_v24  ;;  %5523 = vmatpush3.bf16.msra.mxu0 %v6078_v50 }
  0x4e   : > { %5524 = vmatprep.subr.bf16.mxu0 %v6082_v51 }
  0x51   : > { %5525 = vmatpush3.bf16.msra.mxu0 %v6082_v51 }
  0x52   : > { %5574 = vmatprep.subr.bf16.mxu0 %v6538_v53 }
  0x54   : > { %651 = vmatmul.mubr.bf16.gmra.mxu0 %v6046_v25 }
  0x55   : > { %658 = vmatprep.mubr.bf16.mxu0 %v6047_v26 }
  0x5c   : > { %659 = vmatmul.mubr.bf16.gmra.mxu0 %v6049_v27 }
  0x5d   : > { %666 = vmatprep.mubr.bf16.mxu0 %v6050_v28 }
  0x64   : > { %667 = vmatmul.mubr.bf16.gmra.mxu0 %v6052_v29 }
  0x65   : > { %674 = vmatprep.mubr.bf16.mxu0 %v6053_v30 }
  0x6c   : > { %675 = vmatmul.mubr.bf16.gmra.mxu0 %v6055_v31  ;;  %v6088_v31 = vld [vmem:[%s7670_s3 + $0xf0] sm:$0xff]  }
  0x6d   : > { %682 = vmatprep.mubr.bf16.mxu0 %v6056_v32 }
  0x74   : > { %683 = vmatmul.mubr.bf16.gmra.mxu0 %v6058_v33 }
  0x75   : > { %690 = vmatprep.mubr.bf16.mxu0 %v6059_v34 }
  0x7c   : > { %691 = vmatmul.mubr.bf16.gmra.mxu0 %v6061_v36 }
  0xf4   : > { %v5102_v54 = vpop.f32.mrf.mxu0 }
  0xf6   : > { %v5103_v55 = vpop.f32.mrf.mxu0 }
  0xf7   : > { %v5104_v56 = vadd.f32 %v5103_v55, %v5102_v54 }
  0xf8   : > { %v5105_v58 = vpop.f32.mrf.mxu0 }
  0xf9   : > { %v621_v60 = vadd.f32 %v5104_v56, %v6544_v57 }
  0xfa   : > { %v5106_v59 = vpop.f32.mrf.mxu0 }
  0xfb   : > { %v5107_v61 = vadd.f32 %v5106_v59, %v5105_v58  ;;  %v699_v1 = vmax.f32 %v621_v60, 0.0 }
  0xfc   : > { %v5108_v62 = vpop.f32.mrf.mxu0 }
  0xfd   : > { %v624_v63 = vadd.f32 %v5107_v61, %v6544_v57 }
  0xfe   : > { %v5109_v0 = vpop.f32.mrf.mxu0 }
  0xff   : > { %v700_v2 = vmax.f32 %v624_v63, 0.0  ;;  %v5110_v3 = vadd.f32 %v5109_v0, %v5108_v62 }
 0x100   : > { %v5111_v4 = vpop.f32.mrf.mxu0 }
 0x101   : > { %v5030_v5 = vpack.c.bf16 %v700_v2, %v699_v1  ;;  %v629_v7 = vadd.f32 %v5110_v3, %v6544_v57  ;;  %v6097_v2 = vld [vmem:[%s7670_s3 + $0xd8] sm:$0xff]  }
 0x102   : > { %v5112_v6 = vpop.f32.mrf.mxu0 }
 0x103   : > { %5031 = vst [vmem:[#allocation2] sm:$0xff] %v5030_v5   ;;  %v5113_v8 = vadd.f32 %v5112_v6, %v5111_v4  ;;  %v701_v12 = vmax.f32 %v629_v7, 0.0 }
 0x104   : > { %v5114_v9 = vpop.f32.mrf.mxu0 }
 0x105   : > { %v632_v10 = vadd.f32 %v5113_v8, %v6544_v57  ;;  %v6093_v8 = vld [vmem:[%s7670_s3 + $0x1f0] sm:$0xff]  }
 0x106   : > { %v5115_v11 = vpop.f32.mrf.mxu0 }
 0x107   : > { %v702_v13 = vmax.f32 %v632_v10, 0.0  ;;  %v5116_v14 = vadd.f32 %v5115_v11, %v5114_v9  ;;  %v6100_v11 = vld [vmem:[%s7670_s3 + $0xd0] sm:$0xff]  }
 0x108   : > { %v5117_v15 = vpop.f32.mrf.mxu0 }
 0x109   : > { %v5035_v16 = vpack.c.bf16 %v702_v13, %v701_v12  ;;  %v637_v19 = vadd.f32 %v5116_v14, %v6544_v57 }
 0x10a   : > { %v5118_v17 = vpop.f32.mrf.mxu0  ;;  %v6072_v18 = vld [vmem:[#allocation2] sm:$0xff]  }
 0x10b   : > { %5077 = vst [vmem:[#allocation2 + $0x8] sm:$0xff] %v5035_v16   ;;  %v5119_v20 = vadd.f32 %v5118_v17, %v5117_v15  ;;  %v6079_v21 = vld [vmem:[#allocation2] sm:$0xff]   ;;  %5430 = vmatprep.mubr.bf16.mxu1 %v6072_v18  ;;  %v703_v26 = vmax.f32 %v637_v19, 0.0  ;;  %v6096_v19 = vld [vmem:[%s7670_s3 + $0x1e8] sm:$0xff]  }
 0x10c   : > { %v5120_v22 = vpop.f32.mrf.mxu0  ;;  %v1628_v25 = vshll.u32 %v6079_v21, 16  ;;  %v1626_v39 = vshrl.u32 %v6079_v21, 16 }
 0x10d   : > { %v640_v23 = vadd.f32 %v5119_v20, %v6544_v57 }
 0x10e   : > { %v5121_v24 = vpop.f32.mrf.mxu0  ;;  %v1630_v34 = vrot.slane %v1628_v25, 1 }
 0x10f   : > { %v704_v27 = vmax.f32 %v640_v23, 0.0  ;;  %v5122_v28 = vadd.f32 %v5121_v24, %v5120_v22 }
 0x110   : > { %v5123_v29 = vpop.f32.mrf.mxu0  ;;  %v1631_v43 = vor.u32 %v1630_v34, %v1626_v39 }
 0x111   : > { %v5040_v30 = vpack.c.bf16 %v704_v27, %v703_v26  ;;  %v645_v35 = vadd.f32 %v5122_v28, %v6544_v57 }
 0x112   : > { %v5124_v32 = vpop.f32.mrf.mxu0  ;;  %v6555_v33 = vld [vmem:[#allocation2 + $0x8] sm:$0xff]  }
 0x113   : > { %5078 = vst [vmem:[#allocation2 + $0x10] sm:$0xff] %v5040_v30   ;;  %v5125_v36 = vadd.f32 %v5124_v32, %v5123_v29  ;;  %v6080_v37 = vld [vmem:[#allocation2 + $0x8] sm:$0xff]   ;;  %5431 = vmatmul.mubr.bf16.vlgmr.msra.gmra.mxu1 %v6555_v33  ;;  %v705_v45 = vmax.f32 %v645_v35, 0.0  ;;  %v6099_v29 = vld [vmem:[%s7670_s3 + $0x1e0] sm:$0xff]  }
 0x114   : > { %v5126_v38 = vpop.f32.mrf.mxu0  ;;  %v1633_v41 = vshll.u32 %v6080_v37, 16  ;;  %5447 = vmatpush3.bf16.msra.mxu1 %v6086_v52  ;;  %v6094_v52 = vld [vmem:[%s7670_s3 + $0xe0] sm:$0xff]   ;;  %v1637_v60 = vshrl.u32 %v6080_v37, 16 }
 0x115   : > { %v648_v40 = vadd.f32 %v5125_v36, %v6544_v57  ;;  %5448 = vmatprep.subr.bf16.mxu1 %v6088_v31  ;;  %v6106_v32 = vld [vmem:[%s7670_s3 + $0xc0] sm:$0xff]  }
 0x116   : > { %v5127_v42 = vpop.f32.mrf.mxu0  ;;  %v1635_v48 = vrot.slane %v1633_v41, 1  ;;  %v6102_v41 = vld [vmem:[%s7670_s3 + $0x1d8] sm:$0xff]  }
 0x117   : > { %v706_v46 = vmax.f32 %v648_v40, 0.0  ;;  %v5128_v47 = vadd.f32 %v5127_v42, %v5126_v38 }
 0x118   : > { %v5129_v49 = vpop.f32.mrf.mxu0  ;;  %v1636_v51 = vsel %vm1624_vm0, %v1631_v43, %v1635_v48  ;;  %5449 = vmatpush3.bf16.msra.mxu1 %v6088_v31  ;;  %v1639_v0 = vor.u32 %v1637_v60, %v1635_v48 }
 0x119   : > { %v5045_v50 = vpack.c.bf16 %v706_v46, %v705_v45  ;;  %5526 = vmatprep.mubr.bf16.mxu0 %v1636_v51  ;;  %5450 = vmatprep.subr.bf16.mxu1 %v6091_v44  ;;  %v653_v56 = vadd.f32 %v5128_v47, %v6544_v57  ;;  %v6618_v46 = vld [vmem:[%s7670_s3 + $0x1b8] sm:$0xff]  }
 0x11a   : > { %v5130_v54 = vpop.f32.mrf.mxu0  ;;  %v6567_v55 = vld [vmem:[#allocation2 + $0x10] sm:$0xff]  }
 0x11b   : > { %5079 = vst [vmem:[#allocation2 + $0x18] sm:$0xff] %v5045_v50   ;;  %v5131_v58 = vadd.f32 %v5130_v54, %v5129_v49  ;;  %v6083_v59 = vld [vmem:[#allocation2 + $0x10] sm:$0xff]   ;;  %5434 = vmatprep.mubr.bf16.mxu1 %v6567_v55  ;;  %v707_v3 = vmax.f32 %v653_v56, 0.0 }
 0x11c   : > { %v5132_v61 = vpop.f32.mrf.mxu0  ;;  %v1641_v63 = vshll.u32 %v6083_v59, 16  ;;  %5451 = vmatpush3.bf16.msra.mxu1 %v6091_v44  ;;  %v1645_v18 = vshrl.u32 %v6083_v59, 16 }
 0x11d   : > { %v656_v62 = vadd.f32 %v5131_v58, %v6544_v57  ;;  %5452 = vmatprep.subr.bf16.mxu1 %v6094_v52 }
 0x11e   : > { %v5133_v1 = vpop.f32.mrf.mxu0  ;;  %v1643_v6 = vrot.slane %v1641_v63, 1 }
 0x11f   : > { %v708_v4 = vmax.f32 %v656_v62, 0.0  ;;  %v5134_v5 = vadd.f32 %v5133_v1, %v5132_v61  ;;  %v6108_v1 = vld [vmem:[%s7670_s3 + $0x1c8] sm:$0xff]  }
 0x120   : > { %v5135_v7 = vpop.f32.mrf.mxu0  ;;  %v6579_v10 = vsel %vm1624_vm0, %v1639_v0, %v1643_v6  ;;  %5453 = vmatpush3.bf16.msra.mxu1 %v6094_v52  ;;  %v1647_v23 = vor.u32 %v1645_v18, %v1643_v6  ;;  %v6105_v52 = vld [vmem:[%s7670_s3 + $0x1d0] sm:$0xff]  }
 0x121   : > { %v5050_v9 = vpack.c.bf16 %v708_v4, %v707_v3  ;;  %5527 = vmatmul.mubr.bf16.vlgmr.msra.gmra.mxu0 %v6579_v10  ;;  %5454 = vmatprep.subr.bf16.mxu1 %v6097_v2  ;;  %v661_v14 = vadd.f32 %v5134_v5, %v6544_v57 }
 0x122   : > { %v5136_v12 = vpop.f32.mrf.mxu0  ;;  %v6585_v13 = vld [vmem:[#allocation2 + $0x18] sm:$0xff]   ;;  %5575 = vmatpush3.bf16.msra.mxu0 %v6538_v53  ;;  %v6103_v53 = vld [vmem:[%s7670_s3 + $0xc8] sm:$0xff]  }
 0x123   : > { %5080 = vst [vmem:[#allocation2 + $0x20] sm:$0xff] %v5050_v9   ;;  %v5137_v15 = vadd.f32 %v5136_v12, %v5135_v7  ;;  %v6085_v16 = vld [vmem:[#allocation2 + $0x18] sm:$0xff]   ;;  %5435 = vmatmul.mubr.bf16.gmra.mxu1 %v6585_v13  ;;  %5576 = vmatprep.subr.bf16.mxu0 %v6093_v8  ;;  %v709_v24 = vmax.f32 %v661_v14, 0.0  ;;  %v6110_v12 = vld [vmem:[%s7670_s3 + $0x1c0] sm:$0xff]  }
 0x124   : > { %v5138_v17 = vpop.f32.mrf.mxu0  ;;  %v1649_v21 = vshll.u32 %v6085_v16, 16  ;;  %5455 = vmatpush3.bf16.msra.mxu1 %v6097_v2  ;;  %v1653_v40 = vshrl.u32 %v6085_v16, 16 }
 0x125   : > { %v664_v20 = vadd.f32 %v5137_v15, %v6544_v57  ;;  %5456 = vmatprep.subr.bf16.mxu1 %v6100_v11 }
 0x126   : > { %v5139_v22 = vpop.f32.mrf.mxu0  ;;  %v1651_v27 = vrot.slane %v1649_v21, 1  ;;  %5577 = vmatpush3.bf16.msra.mxu0 %v6093_v8 }
 0x127   : > { %v710_v25 = vmax.f32 %v664_v20, 0.0  ;;  %v5140_v26 = vadd.f32 %v5139_v22, %v5138_v17  ;;  %5578 = vmatprep.subr.bf16.mxu0 %v6096_v19  ;;  %v6112_v22 = vld [vmem:[%s7670_s3 + $0x178] sm:$0xff]  }
 0x128   : > { %v5141_v28 = vpop.f32.mrf.mxu0  ;;  %v6601_v31 = vsel %vm1624_vm0, %v1647_v23, %v1651_v27  ;;  %5457 = vmatpush3.bf16.msra.mxu1 %v6100_v11  ;;  %v1655_v45 = vor.u32 %v1653_v40, %v1651_v27 }
 0x129   : > { %v5055_v30 = vpack.c.bf16 %v710_v25, %v709_v24  ;;  %5530 = vmatprep.mubr.bf16.mxu0 %v6601_v31  ;;  %5458 = vmatprep.subr.bf16.mxu1 %v6103_v53  ;;  %v669_v36 = vadd.f32 %v5140_v26, %v6544_v57 }
 0x12a   : > { %v5142_v34 = vpop.f32.mrf.mxu0  ;;  %v6607_v35 = vld [vmem:[#allocation2 + $0x20] sm:$0xff]   ;;  %5579 = vmatpush3.bf16.msra.mxu0 %v6096_v19 }
 0x12b   : > { %5081 = vst [vmem:[#allocation2 + $0x28] sm:$0xff] %v5055_v30   ;;  %v5143_v37 = vadd.f32 %v5142_v34, %v5141_v28  ;;  %v6089_v38 = vld [vmem:[#allocation2 + $0x20] sm:$0xff]   ;;  %5438 = vmatprep.mubr.bf16.mxu1 %v6607_v35  ;;  %5580 = vmatprep.subr.bf16.mxu0 %v6099_v29  ;;  %v711_v47 = vmax.f32 %v669_v36, 0.0 }
 0x12c   : > { %v5144_v39 = vpop.f32.mrf.mxu0  ;;  %v1657_v43 = vshll.u32 %v6089_v38, 16  ;;  %5459 = vmatpush3.bf16.msra.mxu1 %v6103_v53  ;;  %v1661_v0 = vshrl.u32 %v6089_v38, 16 }
 0x12d   : > { %v672_v42 = vadd.f32 %v5143_v37, %v6544_v57  ;;  %5460 = vmatprep.subr.bf16.mxu1 %v6106_v32 }
 0x12e   : > { %v5145_v44 = vpop.f32.mrf.mxu0  ;;  %v1659_v50 = vrot.slane %v1657_v43, 1  ;;  %5581 = vmatpush3.bf16.msra.mxu0 %v6099_v29 }
 0x12f   : > { %v712_v48 = vmax.f32 %v672_v42, 0.0  ;;  %v5146_v49 = vadd.f32 %v5145_v44, %v5144_v39  ;;  %5582 = vmatprep.subr.bf16.mxu0 %v6102_v41 }
 0x130   : > { %v5147_v51 = vpop.f32.mrf.mxu0  ;;  %v6624_v56 = vsel %vm1624_vm0, %v1655_v45, %v1659_v50  ;;  %5461 = vmatpush3.bf16.msra.mxu1 %v6106_v32  ;;  %v1663_v5 = vor.u32 %v1661_v0, %v1659_v50  ;;  %v6117_v0 = vld [vmem:[%s7670_s3 + $0x198] sm:$0xff]  }
 0x131   : > { %v5060_v54 = vpack.c.bf16 %v712_v48, %v711_v47  ;;  %5531 = vmatmul.mubr.bf16.gmra.mxu0 %v6624_v56  ;;  %5478 = vmatprep.subr.bf16.mxu1 %v6618_v46  ;;  %v677_v60 = vadd.f32 %v5146_v49, %v6544_v57 }
 0x132   : > { %v5148_v58 = vpop.f32.mrf.mxu0  ;;  %v6627_v59 = vld [vmem:[#allocation2 + $0x28] sm:$0xff]   ;;  %5583 = vmatpush3.bf16.msra.mxu0 %v6102_v41 }
 0x133   : > { %5082 = vst [vmem:[#allocation2 + $0x30] sm:$0xff] %v5060_v54   ;;  %v5149_v61 = vadd.f32 %v5148_v58, %v5147_v51  ;;  %v6095_v62 = vld [vmem:[#allocation2 + $0x28] sm:$0xff]   ;;  %5439 = vmatmul.mubr.bf16.gmra.mxu1 %v6627_v59  ;;  %5584 = vmatprep.subr.bf16.mxu0 %v6105_v52  ;;  %v713_v6 = vmax.f32 %v677_v60, 0.0  ;;  %v6111_v60 = vld [vmem:[%s7670_s3 + $0x1b0] sm:$0xff]  }
 0x134   : > { %v5150_v63 = vpop.f32.mrf.mxu0  ;;  %v1665_v3 = vshll.u32 %v6095_v62, 16  ;;  %v1669_v24 = vshrl.u32 %v6095_v62, 16  ;;  %v6116_v62 = vld [vmem:[%s7670_s3 + $0x168] sm:$0xff]  }
 0x135   : > { %v680_v2 = vadd.f32 %v5149_v61, %v6544_v57  ;;  %v6115_v61 = vld [vmem:[%s7670_s3 + $0x1a0] sm:$0xff]  }
 0x136   : > { %v5151_v4 = vpop.f32.mrf.mxu0  ;;  %v1667_v9 = vrot.slane %v1665_v3, 1  ;;  %5585 = vmatpush3.bf16.msra.mxu0 %v6105_v52  ;;  %v6119_v3 = vld [vmem:[%s7670_s3 + $0x160] sm:$0xff]  }
 0x137   : > { %v714_v7 = vmax.f32 %v680_v2, 0.0  ;;  %v5152_v8 = vadd.f32 %v5151_v4, %v5150_v63  ;;  %5586 = vmatprep.subr.bf16.mxu0 %v6108_v1 }
 0x138   : > { %v5153_v11 = vpop.f32.mrf.mxu0  ;;  %v6641_v16 = vsel %vm1624_vm0, %v1663_v5, %v1667_v9  ;;  %v1671_v28 = vor.u32 %v1669_v24, %v1667_v9  ;;  %v6122_v9 = vld [vmem:[%s7670_s3 + $0x158] sm:$0xff]   ;;  %v6128_v24 = vld [vmem:[%s7670_s3 + $0x148] sm:$0xff]  }
 0x139   : > { %v5065_v14 = vpack.c.bf16 %v714_v7, %v713_v6  ;;  %v685_v15 = vadd.f32 %v5152_v8, %v6544_v57  ;;  %5534 = vmatprep.mubr.bf16.mxu0 %v6641_v16  ;;  %v6120_v6 = vld [vmem:[%s7670_s3 + $0x190] sm:$0xff]  }
 0x13a   : > { %v5154_v17 = vpop.f32.mrf.mxu0  ;;  %v6644_v18 = vld [vmem:[#allocation2 + $0x30] sm:$0xff]   ;;  %5587 = vmatpush3.bf16.msra.mxu0 %v6108_v1 }
 0x13b   : > { %5083 = vst [vmem:[#allocation2 + $0x38] sm:$0xff] %v5065_v14   ;;  %v5155_v19 = vadd.f32 %v5154_v17, %v5153_v11  ;;  %v6101_v20 = vld [vmem:[#allocation2 + $0x30] sm:$0xff]   ;;  %5442 = vmatprep.mubr.bf16.mxu1 %v6644_v18  ;;  %5588 = vmatprep.subr.bf16.mxu0 %v6110_v12  ;;  %v715_v23 = vmax.f32 %v685_v15, 0.0  ;;  %v6123_v14 = vld [vmem:[%s7670_s3 + $0x188] sm:$0xff]  }
 0x13c   : > { %v5156_v21 = vpop.f32.mrf.mxu0  ;;  %v1673_v25 = vshll.u32 %v6101_v20, 16  ;;  %v1677_v44 = vshrl.u32 %v6101_v20, 16 }
 0x13d   : > { %v688_v53 = vadd.f32 %v5155_v19, %v6544_v57  ;;  %v6126_v19 = vld [vmem:[%s7670_s3 + $0x150] sm:$0xff]  }
 0x13e   : > { %v5157_v26 = vpop.f32.mrf.mxu0  ;;  %v1675_v29 = vrot.slane %v1673_v25, 1  ;;  %5589 = vmatpush3.bf16.msra.mxu0 %v6110_v12  ;;  %v6727_v25 = vld [vmem:[#allocation2 + $0x8] sm:$0xff]  }
 0x13f   : > { %v716_v27 = vmax.f32 %v688_v53, 0.0  ;;  %v5158_v30 = vadd.f32 %v5157_v26, %v5156_v21  ;;  %5638 = vmatprep.subr.bf16.mxu0 %v6112_v22  ;;  %v6131_v53 = vld [vmem:[#allocation2 + $0x10] sm:$0xff]  }
 0x140   : > { %v5159_v32 = vpop.f32.mrf.mxu0  ;;  %v6652_v36 = vsel %vm1624_vm0, %v1671_v28, %v1675_v29  ;;  %v1679_v48 = vor.u32 %v1677_v44, %v1675_v29  ;;  %v2408_v28 = vrot.slane %v6131_v53, 1  ;;  %v2406_v29 = vrot.slane %v6727_v25, 1 }
 0x141   : > { %v5070_v34 = vpack.c.bf16 %v716_v27, %v715_v23  ;;  %v693_v37 = vadd.f32 %v5158_v30, %v6544_v57  ;;  %5535 = vmatmul.mubr.bf16.gmra.mxu0 %v6652_v36  ;;  %v6129_v27 = vld [vmem:[%s7670_s3 + $0x138] sm:$0xff]   ;;  %v6132_v30 = vld [vmem:[%s7670_s3 + $0x140] sm:$0xff]  }
 0x142   : > { %v848_v38 = vld [vmem:[#allocation2 + $0x38] sm:$0xf]  ;;  %v5160_v39 = vpop.f32.mrf.mxu0  ;;  %v849_v2 = vld [vmem:[#allocation2 + $0x3c] sm:$0xf] }
 0x143   : > { %5084 = vst [vmem:[#allocation2 + $0x40] sm:$0xff] %v5070_v34   ;;  %v4569_v40 = vcombine.low %v848_v38, %v848_v38  ;;  %v6107_v41 = vld [vmem:[#allocation2 + $0x38] sm:$0xff]   ;;  %v5161_v42 = vadd.f32 %v5160_v39, %v5159_v32  ;;  %v717_v43 = vmax.f32 %v693_v37, 0.0  ;;  %v6696_v8 = vcombine.low %v848_v38, %v849_v2  ;;  %v6133_v34 = vld [vmem:[%s7670_s3 + $0x130] sm:$0xff]   ;;  %v6136_v37 = vld [vmem:[#allocation2 + $0x20] sm:$0xff]  }
 0x144   : > { %v1681_v45 = vshll.u32 %v6107_v41, 16  ;;  %v1685_v50 = vshrl.u32 %v6107_v41, 16  ;;  %v6134_v32 = vld [vmem:[#allocation2 + $0x18] sm:$0xff]   ;;  %v6135_v39 = vld [vmem:[%s7670_s3 + $0x128] sm:$0xff]  }
 0x145   : > { %5443 = vmatmul.mubr.bf16.gmra.mxu1 %v4569_v40  ;;  %v696_v47 = vadd.f32 %v5161_v42, %v6544_v57  ;;  %v6113_v57 = vld [vmem:[%s7670_s3 + $0x1a8] sm:$0xff]   ;;  %v2410_v38 = vrot.slane %v6134_v32, 1  ;;  %v2412_v40 = vrot.slane %v6136_v37, 1 }
 0x146   : > { %5462 = vmatprep.mubr.bf16.mxu1 %v6555_v33  ;;  %v1683_v49 = vrot.slane %v1681_v45, 1  ;;  %v6114_v33 = vld [vmem:[%s7670_s3 + $0x170] sm:$0xff]   ;;  %v6138_v42 = vld [vmem:[#allocation2 + $0x28] sm:$0xff]   ;;  %v6139_v45 = vld [vmem:[%s7670_s3 + $0x118] sm:$0xff]  }
 0x147   : > { %v718_v51 = vmax.f32 %v696_v47, 0.0  ;;  %v6752_v41 = vsel %vm2404_vm1, %v2408_v28, %v2410_v38  ;;  %v2414_v44 = vrot.slane %v6138_v42, 1 }
 0x148   : > { %v6659_v52 = vsel %vm1624_vm0, %v1679_v48, %v1683_v49  ;;  %v1687_v54 = vor.u32 %v1685_v50, %v1683_v49  ;;  %v6143_v50 = vld [vmem:[#allocation2 + $0x38] sm:$0xff]  }
 0x149   : > { %v5075_v58 = vpack.c.bf16 %v718_v51, %v717_v43  ;;  %5538 = vmatprep.mubr.bf16.mxu0 %v6659_v52  ;;  %v6140_v43 = vld [vmem:[#allocation2 + $0x30] sm:$0xff]   ;;  %v6768_v49 = vsel %vm2404_vm1, %v2412_v40, %v2414_v44 }
 0x14a   : > { %5539 = vmatmul.mubr.bf16.gmra.mxu0 %v1687_v54  ;;  %v6708_v15 = vld [vmem:[#allocation2 + $0x40] sm:$0xf]  ;;  %v2416_v47 = vrot.slane %v6140_v43, 1  ;;  %v851_v48 = vld [vmem:[#allocation2 + $0x44] sm:$0xf] }
 0x14b   : > { %5085 = vst [vmem:[#allocation2 + $0x48] sm:$0xff] %v5075_v58   ;;  %5590 = vmatprep.mubr.bf16.mxu0 %v6601_v31  ;;  %v4595_v21 = vcombine.low %v6708_v15, %v6708_v15  ;;  %v6145_v51 = vld [vmem:[#allocation2 + $0x40] sm:$0xff]   ;;  %v6780_v58 = vrot.slane %v6143_v50, 1 }
 0x14d   : > { %5463 = vmatmul.mubr.bf16.vlgmr.msra.gmra.mxu1 %v6567_v55 }
 0x14e   : > { %5479 = vmatpush3.bf16.msra.mxu1 %v6618_v46  ;;  %5466 = vmatprep.mubr.bf16.mxu1 %v6585_v13  ;;  %v6121_v46 = vld [vmem:[#allocation2 + $0x40] sm:$0xff]  }
 0x14f   : > { %5480 = vmatprep.subr.bf16.mxu1 %v6111_v60  ;;  %v1908_v1 = vshll.u32 %v6121_v46, 16  ;;  %v1912_v4 = vshrl.u32 %v6121_v46, 16 }
 0x151   : > { %v1910_v7 = vrot.slane %v1908_v1, 1  ;;  %v6151_v1 = vld [vmem:[%s7670_s3 + $0xa0] sm:$0xff]  }
 0x152   : > { %5481 = vmatpush3.bf16.msra.mxu1 %v6111_v60  ;;  %5591 = vmatmul.mubr.bf16.vlgmr.msra.gmra.mxu0 %v6624_v56  ;;  %v6124_v63 = vld [vmem:[#allocation2 + $0x48] sm:$0x1f]  }
 0x153   : > { %5482 = vmatprep.subr.bf16.mxu1 %v6113_v57  ;;  %5594 = vmatprep.mubr.bf16.mxu0 %v6641_v16  ;;  %v2129_v5 = vshll.u32 %v6124_v63, 16  ;;  %v6702_v11 = vor.u32 %v1912_v4, %v1910_v7  ;;  %v6716_v20 = vsel %vm1624_vm0, %v1687_v54, %v1910_v7  ;;  %v2133_v23 = vshrl.u32 %v6124_v63, 16  ;;  %v6144_v60 = vld [vmem:[%s7670_s3 + $0x108] sm:$0xff]   ;;  %v6148_v63 = vld [vmem:[%s7670_s3 + $0xb8] sm:$0xff]   ;;  %v6160_v7 = vld [vmem:[%s7670_s3 + $0x220] sm:$0xff]  }
 0x154   : > { %5639 = vmatpush3.bf16.msra.mxu0 %v6112_v22  ;;  %v6127_v22 = vld [vmem:[%s7670_s3 + $0x180] sm:$0xff]   ;;  %v4620_v54 = vcombine.low %v6708_v15, %v851_v48  ;;  %v6146_v46 = vld [vmem:[#allocation2 + $0x48] ss:$0 sps:$4 sm:$0xff]   ;;  %v6157_v4 = vld [vmem:[%s7670_s3 + $0x238] sm:$0xff]  }
 0x155   : > { %5467 = vmatmul.mubr.bf16.gmra.mxu1 %v6607_v35  ;;  %5640 = vmatprep.subr.bf16.mxu0 %v6114_v33  ;;  %v2131_v12 = vrot.slane %v2129_v5, 1  ;;  %v6158_v5 = vld [vmem:[%s7670_s3 + $0x230] sm:$0xff]  }
 0x156   : > { %5483 = vmatpush3.bf16.msra.mxu1 %v6113_v57  ;;  %5470 = vmatprep.mubr.bf16.mxu1 %v6627_v59  ;;  %v6785_v57 = vrot.slane %v6145_v51, 1 }
 0x157   : > { %5484 = vmatprep.subr.bf16.mxu1 %v6115_v61  ;;  %v2132_v17 = vsel %vm1624_vm0, %v6702_v11, %v2131_v12  ;;  %v2135_v26 = vor.u32 %v2133_v23, %v2131_v12  ;;  %v6164_v12 = vld [vmem:[%s7670_s3 + $0x200] sm:$0xff]  }
 0x158   : > { %5641 = vmatpush3.bf16.msra.mxu0 %v6114_v33  ;;  %v6789_v33 = vsel %vm2404_vm1, %v2416_v47, %v6780_v58 }
 0x159   : > { %5642 = vmatprep.subr.bf16.mxu0 %v6116_v62 }
 0x15a   : > { %5485 = vmatpush3.bf16.msra.mxu1 %v6115_v61  ;;  %5595 = vmatmul.mubr.bf16.gmra.mxu0 %v6652_v36  ;;  %v6795_v61 = vsel %vm2404_vm1, %v6780_v58, %v6785_v57 }
 0x15b   : > { %5486 = vmatprep.subr.bf16.mxu1 %v6117_v0  ;;  %5598 = vmatprep.mubr.bf16.mxu0 %v6659_v52 }
 0x15c   : > { %5643 = vmatpush3.bf16.msra.mxu0 %v6116_v62  ;;  %v6147_v62 = vld [vmem:[%s7670_s3 + $0x100] sm:$0xff]  }
 0x15d   : > { %5471 = vmatmul.mubr.bf16.gmra.mxu1 %v6644_v18  ;;  %5644 = vmatprep.subr.bf16.mxu0 %v6119_v3 }
 0x15e   : > { %5487 = vmatpush3.bf16.msra.mxu1 %v6117_v0  ;;  %5474 = vmatprep.mubr.bf16.mxu1 %v6696_v8  ;;  %v6149_v0 = vld [vmem:[%s7670_s3 + $0xb0] sm:$0xff]  }
 0x15f   : > { %5488 = vmatprep.subr.bf16.mxu1 %v6120_v6 }
 0x160   : > { %5645 = vmatpush3.bf16.msra.mxu0 %v6119_v3  ;;  %v6156_v3 = vld [vmem:[%s7670_s3 + $0x80] sm:$0xff]  }
 0x161   : > { %5646 = vmatprep.subr.bf16.mxu0 %v6122_v9 }
 0x162   : > { %5489 = vmatpush3.bf16.msra.mxu1 %v6120_v6  ;;  %5599 = vmatmul.mubr.bf16.gmra.mxu0 %v6716_v20  ;;  %v6159_v6 = vld [vmem:[%s7670_s3 + $0x228] sm:$0xff]  }
 0x163   : > { %5490 = vmatprep.subr.bf16.mxu1 %v6123_v14  ;;  %5602 = vmatprep.mubr.bf16.mxu0 %v2132_v17 }
 0x164   : > { %5647 = vmatpush3.bf16.msra.mxu0 %v6122_v9  ;;  %v6162_v9 = vld [vmem:[%s7670_s3 + $0x210] sm:$0xff]  }
 0x165   : > { %5475 = vmatmul.mubr.bf16.gmra.mxu1 %v4595_v21  ;;  %5648 = vmatprep.subr.bf16.mxu0 %v6126_v19 }
 0x166   : > { %5491 = vmatpush3.bf16.msra.mxu1 %v6123_v14  ;;  %5494 = vmatprep.mubr.bf16.mxu1 %v6567_v55  ;;  %v6740_v55 = vsel %vm2404_vm1, %v2406_v29, %v2408_v28  ;;  %v6165_v14 = vld [vmem:[#allocation2 + $0x48] sm:$0x1f]  }
 0x167   : > { %5492 = vmatprep.subr.bf16.mxu1 %v6127_v22  ;;  %v2854_v15 = vrot.slane %v6165_v14, 1  ;;  %v6175_v14 = vld [vmem:[%s7672_s5 + $0x10] sm:$0xff]  }
 0x168   : > { %5649 = vmatpush3.bf16.msra.mxu0 %v6126_v19 }
 0x169   : > { %5650 = vmatprep.subr.bf16.mxu0 %v6128_v24  ;;  %v2855_v19 = vsel %vm2404_vm1, %v6785_v57, %v2854_v15 }
 0x16a   : > { %5493 = vmatpush3.bf16.msra.mxu1 %v6127_v22  ;;  %5603 = vmatmul.mubr.bf16.gmra.mxu0 %v2135_v26 }
 0x16b   : > { %5542 = vmatprep.subr.bf16.mxu1 %v6129_v27  ;;  %5654 = vmatprep.mubr.bf16.mxu0 %v6740_v55 }
 0x16c   : > { %5651 = vmatpush3.bf16.msra.mxu0 %v6128_v24 }
 0x16d   : > { %5495 = vmatmul.mubr.bf16.vlgmr.msra.gmra.mxu1 %v6585_v13  ;;  %5652 = vmatprep.subr.bf16.mxu0 %v6132_v30  ;;  %v6756_v13 = vsel %vm2404_vm1, %v2410_v38, %v2412_v40 }
 0x16e   : > { %5543 = vmatpush3.bf16.msra.mxu1 %v6129_v27  ;;  %5498 = vmatprep.mubr.bf16.mxu1 %v6607_v35  ;;  %v6137_v35 = vld [vmem:[%s7670_s3 + $0x120] sm:$0xff]  }
 0x16f   : > { %5544 = vmatprep.subr.bf16.mxu1 %v6133_v34 }
 0x170   : > { %5653 = vmatpush3.bf16.msra.mxu0 %v6132_v30 }
 0x172   : > { %5545 = vmatpush3.bf16.msra.mxu1 %v6133_v34 }
 0x173   : > { %5655 = vmatmul.mubr.bf16.vlgmr.msra.gmra.mxu0 %v6752_v41  ;;  %5546 = vmatprep.subr.bf16.mxu1 %v6135_v39 }
 0x174   : > { %5658 = vmatprep.mubr.bf16.mxu0 %v6756_v13 }
 0x175   : > { %5499 = vmatmul.mubr.bf16.gmra.mxu1 %v6627_v59  ;;  %v6772_v59 = vsel %vm2404_vm1, %v2414_v44, %v2416_v47  ;;  %v7677_v44 = vmov 0.0   ;;  %v6166_v47 = vld [vmem:[%s7672_s5 + $0x38] sm:$0xff]  }
 0x176   : > { %5547 = vmatpush3.bf16.msra.mxu1 %v6135_v39  ;;  %5502 = vmatprep.mubr.bf16.mxu1 %v6644_v18  ;;  %v6142_v18 = vld [vmem:[%s7670_s3 + $0x110] sm:$0xff]  }
 0x177   : > { %5548 = vmatprep.subr.bf16.mxu1 %v6137_v35  ;;  %5702 = vmatprep.subr.bf16.mxu0 %v7677_v44 }
 0x17a   : > { %5549 = vmatpush3.bf16.msra.mxu1 %v6137_v35 }
 0x17b   : > { %5659 = vmatmul.mubr.bf16.gmra.mxu0 %v6768_v49  ;;  %5550 = vmatprep.subr.bf16.mxu1 %v6139_v45 }
 0x17c   : > { %5662 = vmatprep.mubr.bf16.mxu0 %v6772_v59 }
 0x17d   : > { %5503 = vmatmul.mubr.bf16.gmra.mxu1 %v6696_v8  ;;  %v6161_v8 = vld [vmem:[%s7670_s3 + $0x218] sm:$0xff]  }
 0x17e   : > { %5551 = vmatpush3.bf16.msra.mxu1 %v6139_v45  ;;  %5506 = vmatprep.mubr.bf16.mxu1 %v4620_v54 }
 0x17f   : > { %5552 = vmatprep.subr.bf16.mxu1 %v6142_v18 }
 0x182   : > { %5553 = vmatpush3.bf16.msra.mxu1 %v6142_v18 }
 0x183   : > { %5663 = vmatmul.mubr.bf16.gmra.mxu0 %v6789_v33  ;;  %5554 = vmatprep.subr.bf16.mxu1 %v6144_v60 }
 0x184   : > { %5666 = vmatprep.mubr.bf16.mxu0 %v6795_v61 }
 0x185   : > { %5507 = vmatmul.mubr.bf16.gmra.mxu1 %v6146_v46 }
 0x186   : > { %5555 = vmatpush3.bf16.msra.mxu1 %v6144_v60  ;;  %5558 = vmatprep.mubr.bf16.mxu1 %v6579_v10  ;;  %v6150_v10 = vld [vmem:[%s7670_s3 + $0xa8] sm:$0xff]  }
 0x187   : > { %5556 = vmatprep.subr.bf16.mxu1 %v6147_v62 }
 0x18a   : > { %5557 = vmatpush3.bf16.msra.mxu1 %v6147_v62 }
 0x18b   : > { %5667 = vmatmul.mubr.bf16.gmra.mxu0 %v6785_v57  ;;  %5606 = vmatprep.subr.bf16.mxu1 %v6148_v63 }
 0x18c   : > { %5718 = vmatprep.mubr.msk.bf16.mxu0 %vm6309_vm2, %v7677_v44 }
 0x18d   : > { %5559 = vmatmul.mubr.bf16.vlgmr.msra.gmra.mxu1 %v6601_v31  ;;  %v6152_v31 = vld [vmem:[%s7670_s3 + $0x98] sm:$0xff]  }
 0x18e   : > { %5607 = vmatpush3.bf16.msra.mxu1 %v6148_v63  ;;  %5562 = vmatprep.mubr.bf16.mxu1 %v6624_v56  ;;  %v6153_v56 = vld [vmem:[%s7670_s3 + $0x90] sm:$0xff]  }
 0x18f   : > { %5608 = vmatprep.subr.bf16.mxu1 %v6149_v0 }
 0x192   : > { %5609 = vmatpush3.bf16.msra.mxu1 %v6149_v0 }
 0x193   : > { %5610 = vmatprep.subr.bf16.mxu1 %v6150_v10 }
 0x195   : > { %5563 = vmatmul.mubr.bf16.gmra.mxu1 %v6641_v16  ;;  %v6154_v16 = vld [vmem:[%s7670_s3 + $0x88] sm:$0xff]  }
 0x196   : > { %5611 = vmatpush3.bf16.msra.mxu1 %v6150_v10  ;;  %5566 = vmatprep.mubr.bf16.mxu1 %v6652_v36  ;;  %v6155_v36 = vld [vmem:[#allocation2] sm:$0xfe]  }
 0x197   : > { %5612 = vmatprep.subr.bf16.mxu1 %v6151_v1  ;;  %v2405_v2 = vrot.slane %v6155_v36, 1 }
 0x19a   : > { %5613 = vmatpush3.bf16.msra.mxu1 %v6151_v1  ;;  %v6170_v1 = vld [vmem:[%s7672_s5 + $0xf0] sm:$0xff]  }
 0x19b   : > { %5614 = vmatprep.subr.bf16.mxu1 %v6152_v31 }
 0x19d   : > { %5567 = vmatmul.mubr.bf16.gmra.mxu1 %v6659_v52  ;;  %v2407_v52 = vsel %vm2404_vm1, %v2405_v2, %v2406_v29 }
 0x19e   : > { %5615 = vmatpush3.bf16.msra.mxu1 %v6152_v31  ;;  %5570 = vmatprep.mubr.bf16.mxu1 %v6716_v20  ;;  %v6171_v31 = vld [vmem:[%s7672_s5 + $0x20] sm:$0xff]  }
 0x19f   : > { %5616 = vmatprep.subr.bf16.mxu1 %v6153_v56 }
 0x1a2   : > { %5617 = vmatpush3.bf16.msra.mxu1 %v6153_v56 }
 0x1a3   : > { %5618 = vmatprep.subr.bf16.mxu1 %v6154_v16 }
 0x1a5   : > { %5571 = vmatmul.mubr.bf16.gmra.mxu1 %v6702_v11  ;;  %v6163_v11 = vld [vmem:[%s7670_s3 + $0x208] sm:$0xff]  }
 0x1a6   : > { %5619 = vmatpush3.bf16.msra.mxu1 %v6154_v16  ;;  %5622 = vmatprep.mubr.bf16.mxu1 %v2407_v52 }
 0x1a7   : > { %5620 = vmatprep.subr.bf16.mxu1 %v6156_v3 }
 0x1aa   : > { %5621 = vmatpush3.bf16.msra.mxu1 %v6156_v3 }
 0x1ab   : > { %5670 = vmatprep.subr.bf16.mxu1 %v6157_v4 }
 0x1ad   : > { %5623 = vmatmul.mubr.bf16.vlgmr.msra.gmra.mxu1 %v6740_v55 }
 0x1ae   : > { %5671 = vmatpush3.bf16.msra.mxu1 %v6157_v4  ;;  %5626 = vmatprep.mubr.bf16.mxu1 %v6752_v41  ;;  %v6172_v4 = vld [vmem:[%s7672_s5 + $0xe8] sm:$0xff]  }
 0x1af   : > { %5672 = vmatprep.subr.bf16.mxu1 %v6158_v5 }
 0x1b2   : > { %5673 = vmatpush3.bf16.msra.mxu1 %v6158_v5  ;;  %v6173_v5 = vld [vmem:[%s7672_s5 + $0x18] sm:$0xff]  }
 0x1b3   : > { %5674 = vmatprep.subr.bf16.mxu1 %v6159_v6 }
 0x1b5   : > { %5627 = vmatmul.mubr.bf16.gmra.mxu1 %v6756_v13 }
 0x1b6   : > { %5675 = vmatpush3.bf16.msra.mxu1 %v6159_v6  ;;  %5630 = vmatprep.mubr.bf16.mxu1 %v6768_v49 }
 0x1b7   : > { %5676 = vmatprep.subr.bf16.mxu1 %v6160_v7 }
 0x1ba   : > { %5677 = vmatpush3.bf16.msra.mxu1 %v6160_v7 }
 0x1bb   : > { %5678 = vmatprep.subr.bf16.mxu1 %v6161_v8 }
 0x1bd   : > { %5631 = vmatmul.mubr.bf16.gmra.mxu1 %v6772_v59 }
 0x1be   : > { %5679 = vmatpush3.bf16.msra.mxu1 %v6161_v8  ;;  %5634 = vmatprep.mubr.bf16.mxu1 %v6789_v33 }
 0x1bf   : > { %5680 = vmatprep.subr.bf16.mxu1 %v6162_v9 }
 0x1c2   : > { %5681 = vmatpush3.bf16.msra.mxu1 %v6162_v9 }
 0x1c3   : > { %5682 = vmatprep.subr.bf16.mxu1 %v6163_v11 }
 0x1c5   : > { %5635 = vmatmul.mubr.bf16.gmra.mxu1 %v6780_v58 }
 0x1c6   : > { %5683 = vmatpush3.bf16.msra.mxu1 %v6163_v11  ;;  %5686 = vmatprep.mubr.bf16.mxu1 %v6752_v41 }
 0x1c7   : > { %5684 = vmatprep.subr.bf16.mxu1 %v6164_v12 }
 0x1ca   : > { %5685 = vmatpush3.bf16.msra.mxu1 %v6164_v12  ;;  %v6174_v12 = vld [vmem:[%s7672_s5 + $0xe0] sm:$0xff]  }
 0x1cb   : > { %5730 = vmatprep.subr.bf16.mxu1 %v7677_v44 }
 0x1cd   : > { %5687 = vmatmul.mubr.bf16.vlgmr.msra.gmra.mxu1 %v6756_v13 }
 0x1ce   : > { %5690 = vmatprep.mubr.bf16.mxu1 %v6768_v49  ;;  %5731 = vmatpush3.bf16.msra.mxu1 %v6166_v47 }
 0x1cf   : > { %5732 = vmatprep.subr.bf16.mxu1 %v7677_v44 }
 0x1d3   : > { %v5432_v17 = vpop.f32.mrf.mxu1 }
 0x1d5   : > { %5691 = vmatmul.mubr.bf16.gmra.mxu1 %v6772_v59  ;;  %v1012_v20 = vpop.f32.mrf.mxu1  ;;  %v6167_v59 = vld [vmem:[%s7672_s5 + $0x30] sm:$0xff]  }
 0x1d6   : > { %5694 = vmatprep.mubr.bf16.mxu1 %v6789_v33  ;;  %5733 = vmatpush3.bf16.msra.mxu1 %v6167_v59  ;;  %v6168_v33 = vld [vmem:[%s7672_s5 + $0xf8] sm:$0xff]  }
 0x1d7   : > { %v5433_v21 = vpop.f32.mrf.mxu1  ;;  %5734 = vmatprep.subr.bf16.mxu1 %v7677_v44  ;;  %5703 = vmatpush3.bf16.msra.mxu0 %v6168_v33 }
 0x1d8   : > { %5704 = vmatprep.subr.bf16.mxu0 %v7677_v44 }
 0x1d9   : > { %v6878_v23 = vpop.f32.mrf.mxu1 }
 0x1db   : > { %5705 = vmatpush3.bf16.msra.mxu0 %v6170_v1 }
 0x1dc   : > { %5706 = vmatprep.subr.bf16.mxu0 %v7677_v44 }
 0x1dd   : > { %5695 = vmatmul.mubr.bf16.gmra.mxu1 %v6795_v61  ;;  %v6169_v61 = vld [vmem:[%s7672_s5 + $0x28] sm:$0xff]  }
 0x1de   : > { %5698 = vmatprep.mubr.bf16.mxu1 %v2855_v19  ;;  %5735 = vmatpush3.bf16.msra.mxu1 %v6169_v61 }
 0x1df   : > { %5736 = vmatprep.subr.bf16.mxu1 %v7677_v44  ;;  %5707 = vmatpush3.bf16.msra.mxu0 %v6172_v4 }
 0x1e0   : > { %5708 = vmatprep.subr.bf16.mxu0 %v7677_v44 }
 0x1e1   : > { %v6876_v22 = vpop.f32.mrf.mxu0 }
 0x1e2   : > { %5737 = vmatpush3.bf16.msra.mxu1 %v6171_v31  ;;  %v6180_v31 = vld [vmem:[%s7672_s5 + $0xc8] sm:$0xff]  }
 0x1e3   : > { %v5436_v53 = vpop.f32.mrf.mxu1  ;;  %v6880_v24 = vpop.f32.mrf.mxu0  ;;  %5738 = vmatprep.subr.bf16.mxu1 %v7677_v44  ;;  %5709 = vmatpush3.bf16.msra.mxu0 %v6174_v12 }
 0x1e4   : > { %5710 = vmatprep.subr.bf16.mxu0 %v7677_v44 }
 0x1e5   : > { %5699 = vmatmul.mubr.bf16.gmra.mxu1 %v2854_v15  ;;  %v1028_v25 = vpop.f32.mrf.mxu1  ;;  %v6882_v26 = vpop.f32.mrf.mxu0 }
 0x1e6   : > { %5739 = vmatpush3.bf16.msra.mxu1 %v6173_v5  ;;  %5746 = vmatprep.mubr.msk.bf16.mxu1 %vm6309_vm2, %v7677_v44 }
 0x1e7   : > { %v5437_v27 = vpop.f32.mrf.mxu1  ;;  %v6884_v28 = vpop.f32.mrf.mxu0  ;;  %5740 = vmatprep.subr.bf16.mxu1 %v7677_v44 }
 0x1e9   : > { %v6888_v30 = vpop.f32.mrf.mxu1 }
 0x1ea   : > { %5741 = vmatpush3.bf16.msra.mxu1 %v6175_v14 }
 0x1eb   : > { %5742 = vmatprep.subr.bf16.mxu1 %v7677_v44 }
 0x1f1   : > { %v6886_v29 = vpop.f32.mrf.mxu0 }
 0x1f3   : > { %v6890_v32 = vpop.f32.mrf.mxu1  ;;  %v6892_v55 = vpop.f32.mrf.mxu0 }
 0x1f5   : > { %v6894_v34 = vpop.f32.mrf.mxu1  ;;  %v6896_v37 = vpop.f32.mrf.mxu0 }
 0x1f7   : > { %v6898_v38 = vpop.f32.mrf.mxu1  ;;  %v6900_v39 = vpop.f32.mrf.mxu0 }
 0x1f9   : > { %v6904_v41 = vpop.f32.mrf.mxu1 }
 0x201   : > { %v6902_v40 = vpop.f32.mrf.mxu0 }
 0x203   : > { %v6906_v42 = vpop.f32.mrf.mxu0 }
 0x205   : > { %v6908_v13 = vpop.f32.mrf.mxu1  ;;  %v6910_v35 = vpop.f32.mrf.mxu0 }
 0x207   : > { %v6912_v43 = vpop.f32.mrf.mxu1  ;;  %v6916_v45 = vpop.f32.mrf.mxu0 }
 0x209   : > { %v5445_v48 = vpop.f32.mrf.mxu1 }
 0x20a   : > { %v6923_v50 = vpop.f32.mrf.mxu0 }
 0x20b   : > { %v6921_v49 = vpop.f32.mrf.mxu1 }
 0x20c   : > { %v6929_v51 = vpop.f32.mrf.mxu0 }
 0x20d   : > { %v5464_v18 = vpop.f32.mrf.mxu1 }
 0x20e   : > { %v6931_v54 = vadd.f32 %v5464_v18, %v5432_v17  ;;  %v5541_v60 = vpop.f32.mrf.mxu0  ;;  %v6178_v18 = vld [vmem:[%s7672_s5 + $0xd0] sm:$0xff]  }
 0x20f   : > { %v1226_v58 = vpop.f32.mrf.mxu1 }
 0x210   : > { %v6934_v57 = vadd.f32 %v1226_v58, %v1012_v20  ;;  %v6942_v62 = vpop.f32.mrf.mxu0  ;;  %v6179_v58 = vld [vmem:[%s7672_s5] sm:$0xff]  }
 0x211   : > { %v5465_v46 = vpop.f32.mrf.mxu1 }
 0x212   : > { %v6944_v63 = vadd.f32 %v5465_v46, %v5433_v21  ;;  %v6948_v10 = vpop.f32.mrf.mxu0 }
 0x213   : > { %v6946_v0 = vpop.f32.mrf.mxu1 }
 0x214   : > { %v6958_v16 = vpop.f32.mrf.mxu0 }
 0x215   : > { %v5468_v56 = vpop.f32.mrf.mxu1 }
 0x216   : > { %v6960_v36 = vadd.f32 %v5468_v56, %v5436_v53  ;;  %v6962_v3 = vpop.f32.mrf.mxu0 }
 0x217   : > { %v1242_v2 = vpop.f32.mrf.mxu1 }
 0x218   : > { %v6966_v52 = vadd.f32 %v1242_v2, %v1028_v25  ;;  %v6974_v7 = vpop.f32.mrf.mxu0  ;;  %v6176_v25 = vld [vmem:[%s7672_s5 + $0xd8] sm:$0xff]  }
 0x219   : > { %v5469_v6 = vpop.f32.mrf.mxu1  ;;  %7681 = vst [vmem:[#allocation7_spill] sm:$0xff] %v6974_v7  ;;  %5711 = vmatpush3.bf16.msra.mxu0 %v6176_v25 }
 0x21a   : > { %v6976_v8 = vadd.f32 %v5469_v6, %v5437_v27  ;;  %v6980_v11 = vpop.f32.mrf.mxu0  ;;  %v6177_v27 = vld [vmem:[%s7672_s5 + $0x8] sm:$0xff]   ;;  %5712 = vmatprep.subr.bf16.mxu0 %v7677_v44 }
 0x21b   : > { %v6978_v9 = vpop.f32.mrf.mxu1  ;;  %5743 = vmatpush3.bf16.msra.mxu1 %v6177_v27 }
 0x21c   : > { %v6990_v17 = vpop.f32.mrf.mxu0  ;;  %5744 = vmatprep.subr.bf16.mxu1 %v7677_v44 }
 0x21d   : > { %v5472_v15 = vpop.f32.mrf.mxu1  ;;  %5713 = vmatpush3.bf16.msra.mxu0 %v6178_v18 }
 0x21e   : > { %v6993_v19 = vadd.f32 %v5472_v15, %v6890_v32  ;;  %v6995_v21 = vpop.f32.mrf.mxu0  ;;  %5714 = vmatprep.subr.bf16.mxu0 %v7677_v44 }
 0x21f   : > { %v1258_v20 = vpop.f32.mrf.mxu1  ;;  %5745 = vmatpush3.bf16.msra.mxu1 %v6179_v58 }
 0x220   : > { %v7000_v53 = vadd.f32 %v1258_v20, %v6894_v34  ;;  %v7008_v47 = vpop.f32.mrf.mxu0  ;;  %5786 = vmatprep.subr.bf16.mxu1 %v7677_v44 }
 0x221   : > { %v5473_v32 = vpop.f32.mrf.mxu1  ;;  %5715 = vmatpush3.bf16.msra.mxu0 %v6180_v31 }
 0x222   : > { %v7011_v48 = vadd.f32 %v5473_v32, %v6898_v38  ;;  %v7015_v34 = vpop.f32.mrf.mxu0  ;;  %5716 = vmatprep.subr.bf16.mxu0 %v7677_v44 }
 0x223   : > { %v7013_v59 = vpop.f32.mrf.mxu1 }
 0x224   : > { %v7025_v60 = vpop.f32.mrf.mxu0 }
 0x225   : > { %v5476_v38 = vpop.f32.mrf.mxu1 }
 0x226   : > { %v7028_v33 = vadd.f32 %v5476_v38, %v6908_v13  ;;  %v7030_v46 = vpop.f32.mrf.mxu0 }
 0x227   : > { %v1274_v61 = vpop.f32.mrf.mxu1 }
 0x228   : > { %v1300_v1 = vadd.f32 %v1274_v61, %v6912_v43  ;;  %v7038_v2 = vpop.f32.mrf.mxu0  ;;  %v6182_v43 = vld [vmem:[%s7672_s5 + $0xc0] sm:$0xff]  }
 0x229   : > { %v5477_v56 = vpop.f32.mrf.mxu1  ;;  %5717 = vmatpush3.bf16.msra.mxu0 %v6182_v43 }
 0x22a   : > { %v7044_v4 = vpop.f32.mrf.mxu0  ;;  %5758 = vmatprep.subr.bf16.mxu0 %v7677_v44 }
 0x22b   : > { %v1277_v13 = vpop.f32.mrf.mxu1 }
 0x22c   : > { %v7050_v6 = vpop.f32.mrf.mxu0 }
 0x22d   : > { %v5496_v5 = vpop.f32.mrf.mxu1 }
 0x22e   : > { %v1504_v12 = vadd.f32 %v5496_v5, %v6931_v54  ;;  %v5605_v15 = vpop.f32.mrf.mxu0 }
 0x22f   : > { %v1440_v14 = vpop.f32.mrf.mxu1 }
 0x230   : > { %v1502_v20 = vadd.f32 %v1440_v14, %v6934_v57  ;;  %v7055_v27 = vpop.f32.mrf.mxu0 }
 0x231   : > { %v5497_v25 = vpop.f32.mrf.mxu1 }
 0x232   : > { %v1505_v32 = vadd.f32 %v5497_v25, %v6944_v63  ;;  %v1293_v63 = vadd.f32 %v6978_v9, %v6888_v30 }
 0x233   : > { %v7058_v18 = vpop.f32.mrf.mxu1  ;;  %v7060_v58 = vpop.f32.mrf.mxu0 }
 0x235   : > { %v5500_v38 = vpop.f32.mrf.mxu1  ;;  %v7062_v61 = vpop.f32.mrf.mxu0 }
 0x236   : > { %7682 = vst [vmem:[#allocation8_spill] sm:$0xff] %v7062_v61  ;;  %v1508_v54 = vadd.f32 %v5500_v38, %v6960_v36 }
 0x237   : > { %v1456_v31 = vpop.f32.mrf.mxu1  ;;  %v7065_v56 = vpop.f32.mrf.mxu0 }
 0x238   : > { %v1506_v43 = vadd.f32 %v1456_v31, %v6966_v52 }
 0x239   : > { %v5501_v57 = vpop.f32.mrf.mxu1  ;;  %v7068_v5 = vpop.f32.mrf.mxu0 }
 0x23a   : > { %7683 = vst [vmem:[#allocation9_spill] sm:$0xff] %v7068_v5  ;;  %v1509_v14 = vadd.f32 %v5501_v57, %v6976_v8  ;;  %v1297_v57 = vadd.f32 %v7013_v59, %v6904_v41 }
 0x23b   : > { %v1459_v15 = vpop.f32.mrf.mxu1  ;;  %v7073_v25 = vpop.f32.mrf.mxu0 }
 0x23c   : > { %v1507_v44 = vadd.f32 %v1459_v15, %v1293_v63 }
 0x23d   : > { %v5504_v61 = vpop.f32.mrf.mxu1  ;;  %v7075_v7 = vpop.f32.mrf.mxu0 }
 0x23e   : > { %v1512_v36 = vadd.f32 %v5504_v61, %v6993_v19  ;;  %v1845_v38 = vadd.f32 %v6900_v39, %v1507_v44 }
 0x23f   : > { %v1472_v52 = vpop.f32.mrf.mxu1  ;;  %v7079_v31 = vpop.f32.mrf.mxu0 }
 0x240   : > { %7684 = vst [vmem:[#allocation10_spill] sm:$0xff] %v7079_v31  ;;  %v1510_v5 = vadd.f32 %v1472_v52, %v7000_v53  ;;  %v1850_v30 = vadd.f32 %v6902_v40, %v1512_v36 }
 0x241   : > { %v5505_v9 = vpop.f32.mrf.mxu1  ;;  %v7083_v8 = vpop.f32.mrf.mxu0 }
 0x242   : > { %7685 = vst [vmem:[#allocation11_spill] sm:$0xff] %v7083_v8  ;;  %v1513_v63 = vadd.f32 %v5505_v9, %v7011_v48  ;;  %v1848_v15 = vadd.f32 %v6906_v42, %v1510_v5  ;;  %v1301_v5 = vadd.f32 %v1277_v13, %v6921_v49  ;;  %v1843_v49 = vadd.f32 %v6882_v26, %v1505_v32 }
 0x243   : > { %v1475_v19 = vpop.f32.mrf.mxu1  ;;  %v7089_v61 = vpop.f32.mrf.mxu0 }
 0x244   : > { %v1511_v39 = vadd.f32 %v1475_v19, %v1297_v57  ;;  %v1851_v44 = vadd.f32 %v6910_v35, %v1513_v63 }
 0x245   : > { %v5508_v31 = vpop.f32.mrf.mxu1  ;;  %v7092_v53 = vpop.f32.mrf.mxu0 }
 0x246   : > { %v1516_v40 = vadd.f32 %v5508_v31, %v7028_v33  ;;  %v1849_v36 = vadd.f32 %v6916_v45, %v1511_v39  ;;  %v1842_v33 = vadd.f32 %v6876_v22, %v1504_v12  ;;  %v1846_v12 = vadd.f32 %v6886_v29, %v1508_v54 }
 0x247   : > { %v1488_v52 = vpop.f32.mrf.mxu1  ;;  %v7096_v8 = vpop.f32.mrf.mxu0 }
 0x248   : > { %v1514_v41 = vadd.f32 %v1488_v52, %v1300_v1  ;;  %v1854_v48 = vadd.f32 %v6923_v50, %v1516_v40  ;;  %v1840_v1 = vadd.f32 %v6880_v24, %v1502_v20 }
 0x249   : > { %v5509_v42 = vpop.f32.mrf.mxu1  ;;  %v7099_v59 = vpop.f32.mrf.mxu0 }
 0x24a   : > { %v1852_v35 = vadd.f32 %v6929_v51, %v1514_v41 }
 0x24b   : > { %v1491_v9 = vpop.f32.mrf.mxu1  ;;  %v7103_v57 = vpop.f32.mrf.mxu0 }
 0x24c   : > { %v1515_v63 = vadd.f32 %v1491_v9, %v1301_v5 }
 0x24d   : > { %v5560_v45 = vpop.f32.mrf.mxu1  ;;  %v7106_v31 = vpop.f32.mrf.mxu0 }
 0x24e   : > { %v2063_v19 = vadd.f32 %v5560_v45, %v1842_v33  ;;  %v1853_v50 = vadd.f32 %v6942_v62, %v1515_v63  ;;  %v1844_v62 = vadd.f32 %v6892_v55, %v1506_v43  ;;  %v1847_v33 = vadd.f32 %v6896_v37, %v1509_v14 }
 0x24f   : > { %v1999_v39 = vpop.f32.mrf.mxu1  ;;  %v5669_v40 = vpop.f32.mrf.mxu0 }
 0x250   : > { %v2061_v52 = vadd.f32 %v1999_v39, %v1840_v1  ;;  %v2284_v51 = vadd.f32 %v6948_v10, %v2063_v19 }
 0x251   : > { %v5561_v13 = vpop.f32.mrf.mxu1 }
 0x252   : > { %v2064_v41 = vadd.f32 %v5561_v13, %v1843_v49  ;;  %v2282_v42 = vadd.f32 %v6958_v16, %v2061_v52 }
 0x253   : > { %v2002_v22 = vpop.f32.mrf.mxu1 }
 0x254   : > { %v2285_v5 = vadd.f32 %v6962_v3, %v2064_v41 }
 0x255   : > { %v5564_v9 = vpop.f32.mrf.mxu1 }
 0x256   : > { %v2067_v24 = vadd.f32 %v5564_v9, %v1846_v12 }
 0x257   : > { %v2015_v20 = vpop.f32.mrf.mxu1 }
 0x258   : > { %v2065_v63 = vadd.f32 %v2015_v20, %v1844_v62  ;;  %v2288_v26 = vadd.f32 %v6980_v11, %v2067_v24  ;;  %v7687_v20 = vld [vmem:[#allocation8_spill] sm:$0xff] }
 0x259   : > { %v5565_v10 = vpop.f32.mrf.mxu1 }
 0x25a   : > { %v2068_v32 = vadd.f32 %v5565_v10, %v1847_v33  ;;  %v2286_v45 = vadd.f32 %v6990_v17, %v2065_v63 }
 0x25b   : > { %v2018_v16 = vpop.f32.mrf.mxu1 }
 0x25c   : > { %v2066_v19 = vadd.f32 %v2018_v16, %v1845_v38  ;;  %v2289_v29 = vadd.f32 %v6995_v21, %v2068_v32  ;;  %v1289_v21 = vadd.f32 %v6946_v0, %v6878_v23 }
 0x25d   : > { %v5568_v54 = vpop.f32.mrf.mxu1 }
 0x25e   : > { %v2071_v3 = vadd.f32 %v5568_v54, %v1850_v30  ;;  %v2287_v1 = vadd.f32 %v7008_v47, %v2066_v19 }
 0x25f   : > { %v2031_v39 = vpop.f32.mrf.mxu1 }
 0x260   : > { %v2069_v55 = vadd.f32 %v2031_v39, %v1848_v15  ;;  %v2292_v43 = vadd.f32 %v7015_v34, %v2071_v3  ;;  %v1503_v15 = vadd.f32 %v7058_v18, %v1289_v21  ;;  %v7689_v3 = vld [vmem:[#allocation10_spill] sm:$0xff] }
 0x261   : > { %v5569_v40 = vpop.f32.mrf.mxu1 }
 0x262   : > { %v2072_v37 = vadd.f32 %v5569_v40, %v1851_v44  ;;  %v2290_v11 = vadd.f32 %v7025_v60, %v2069_v55 }
 0x263   : > { %v2034_v14 = vpop.f32.mrf.mxu1 }
 0x264   : > { %v2070_v52 = vadd.f32 %v2034_v14, %v1849_v36  ;;  %v2293_v17 = vadd.f32 %v7030_v46, %v2072_v37  ;;  %v1841_v36 = vadd.f32 %v6884_v28, %v1503_v15  ;;  %v7690_v37 = vld [vmem:[#allocation11_spill] sm:$0xff] }
 0x265   : > { %v5572_v49 = vpop.f32.mrf.mxu1 }
 0x266   : > { %v2075_v38 = vadd.f32 %v5572_v49, %v1854_v48  ;;  %v2291_v30 = vadd.f32 %v7038_v2, %v2070_v52  ;;  %v2062_v9 = vadd.f32 %v2002_v22, %v1841_v36 }
 0x267   : > { %v2047_v47 = vpop.f32.mrf.mxu1 }
 0x268   : > { %v2073_v13 = vadd.f32 %v2047_v47, %v1852_v35  ;;  %v2296_v34 = vadd.f32 %v7044_v4, %v2075_v38  ;;  %v7686_v4 = vld [vmem:[#allocation7_spill] sm:$0xff] }
 0x269   : > { %v5573_v44 = vpop.f32.mrf.mxu1  ;;  %v2283_v62 = vadd.f32 %v7686_v4, %v2062_v9 }
 0x26a   : > { %v2294_v60 = vadd.f32 %v7050_v6, %v2073_v13 }
 0x26b   : > { %v2050_v41 = vpop.f32.mrf.mxu1 }
 0x26c   : > { %v2074_v46 = vadd.f32 %v2050_v41, %v1853_v50 }
 0x26d   : > { %v5624_v12 = vpop.f32.mrf.mxu1 }
 0x26e   : > { %v2574_v24 = vadd.f32 %v5624_v12, %v2284_v51  ;;  %v7132_v23 = vadd.f32 %v7055_v27, %v2074_v46  ;;  %v7688_v51 = vld [vmem:[#allocation9_spill] sm:$0xff] }
 0x26f   : > { %v2510_v0 = vpop.f32.mrf.mxu1 }
 0x270   : > { %v2572_v2 = vadd.f32 %v2510_v0, %v2282_v42  ;;  %v2789_v18 = vadd.f32 %v7060_v58, %v2574_v24 }
 0x271   : > { %v5625_v48 = vpop.f32.mrf.mxu1 }
 0x272   : > { %v2575_v35 = vadd.f32 %v5625_v48, %v2285_v5  ;;  %v2787_v6 = vadd.f32 %v7687_v20, %v2572_v2 }
 0x273   : > { %v2513_v63 = vpop.f32.mrf.mxu1 }
 0x274   : > { %v2573_v33 = vadd.f32 %v2513_v63, %v2283_v62  ;;  %v2790_v28 = vadd.f32 %v7065_v56, %v2575_v35 }
 0x275   : > { %v5628_v50 = vpop.f32.mrf.mxu1 }
 0x276   : > { %v2578_v22 = vadd.f32 %v5628_v50, %v2288_v26  ;;  %v2788_v10 = vadd.f32 %v7688_v51, %v2573_v33 }
 0x277   : > { %v2526_v27 = vpop.f32.mrf.mxu1 }
 0x278   : > { %v2576_v32 = vadd.f32 %v2526_v27, %v2286_v45  ;;  %v2793_v42 = vadd.f32 %v7073_v25, %v2578_v22 }
 0x279   : > { %v5629_v16 = vpop.f32.mrf.mxu1 }
 0x27a   : > { %v2579_v58 = vadd.f32 %v5629_v16, %v2289_v29  ;;  %v2791_v5 = vadd.f32 %v7075_v7, %v2576_v32 }
 0x27b   : > { %v2529_v19 = vpop.f32.mrf.mxu1 }
 0x27c   : > { %v2577_v54 = vadd.f32 %v2529_v19, %v2287_v1  ;;  %v2794_v39 = vadd.f32 %v7689_v3, %v2579_v58 }
 0x27d   : > { %v5632_v55 = vpop.f32.mrf.mxu1 }
 0x27e   : > { %v2582_v40 = vadd.f32 %v5632_v55, %v2292_v43  ;;  %v2792_v56 = vadd.f32 %v7690_v37, %v2577_v54 }
 0x27f   : > { %v2542_v14 = vpop.f32.mrf.mxu1 }
 0x280   : > { %v2580_v26 = vadd.f32 %v2542_v14, %v2290_v11  ;;  %v2797_v52 = vadd.f32 %v7089_v61, %v2582_v40 }
 0x281   : > { %v5633_v49 = vpop.f32.mrf.mxu1 }
 0x282   : > { %v2583_v45 = vadd.f32 %v5633_v49, %v2293_v17  ;;  %v2795_v25 = vadd.f32 %v7092_v53, %v2580_v26 }
 0x283   : > { %v2545_v21 = vpop.f32.mrf.mxu1 }
 0x284   : > { %v2581_v29 = vadd.f32 %v2545_v21, %v2291_v30  ;;  %v7146_v7 = vadd.f32 %v7096_v8, %v2583_v45  ;;  %v7160_v8 = vld [vmem:[%s7671_s4] ss:$0 sm:$0xff] }
 0x285   : > { %v5636_v1 = vpop.f32.mrf.mxu1 }
 0x286   : > { %v2586_v38 = vadd.f32 %v5636_v1, %v2296_v34  ;;  %v7149_v47 = vadd.f32 %v7099_v59, %v2581_v29 }
 0x287   : > { %v2558_v43 = vpop.f32.mrf.mxu1 }
 0x288   : > { %v2584_v15 = vadd.f32 %v2558_v43, %v2294_v60  ;;  %v7152_v11 = vadd.f32 %v7103_v57, %v2586_v38 }
 0x289   : > { %v5637_v61 = vpop.f32.mrf.mxu1 }
 0x28a   : > { %v7155_v17 = vadd.f32 %v7106_v31, %v2584_v15 }
 0x28b   : > { %v2561_v53 = vpop.f32.mrf.mxu1 }
 0x28d   : > { %v5688_v13 = vpop.f32.mrf.mxu1 }
 0x28e   : > { %v3004_v30 = vadd.f32 %v5688_v13, %v2789_v18 }
 0x28f   : > { %v2940_v34 = vpop.f32.mrf.mxu1 }
 0x290   : > { %v3056_v59 = vadd.f32 %v7160_v8, %v3004_v30  ;;  %v3002_v44 = vadd.f32 %v2940_v34, %v2787_v6 }
 0x291   : > { %v5689_v60 = vpop.f32.mrf.mxu1 }
 0x292   : > { %v3054_v57 = vadd.f32 %v7160_v8, %v3002_v44  ;;  %v3005_v41 = vadd.f32 %v5689_v60, %v2790_v28  ;;  %v3071_v36 = vmax.f32 %v3056_v59, 0.0 }
 0x293   : > { %v2943_v46 = vpop.f32.mrf.mxu1 }
 0x294   : > { %v3057_v31 = vadd.f32 %v7160_v8, %v3005_v41  ;;  %v3003_v12 = vadd.f32 %v2943_v46, %v2788_v10  ;;  %v3069_v24 = vmax.f32 %v3054_v57, 0.0  ;;  %v3101_v18 = vrot.slane %v3071_v36, 1 }
 0x295   : > { %v5692_v9 = vpop.f32.mrf.mxu1 }
 0x296   : > { %v3072_v0 = vmax.f32 %v3057_v31, 0.0  ;;  %v3055_v2 = vadd.f32 %v7160_v8, %v3003_v12  ;;  %v3008_v48 = vadd.f32 %v5692_v9, %v2793_v42  ;;  %v3098_v33 = vrot.slane %v3069_v24, 1  ;;  %v2776_v12 = vpop.f32.mrf.mxu0 }
 0x297   : > { %v2956_v35 = vpop.f32.mrf.mxu1 }
 0x298   : > { %v3103_v4 = vrot.slane %v3072_v0, 1  ;;  %v3070_v62 = vmax.f32 %v3055_v2, 0.0  ;;  %v3060_v20 = vadd.f32 %v7160_v8, %v3008_v48  ;;  %v3006_v6 = vadd.f32 %v2956_v35, %v2791_v5 }
 0x299   : > { %v5693_v63 = vpop.f32.mrf.mxu1 }
 0x29a   : > { %v3104_v28 = vsel %vm2404_vm1, %v3101_v18, %v3103_v4  ;;  %v3099_v50 = vrot.slane %v3070_v62, 1  ;;  %v3058_v22 = vadd.f32 %v7160_v8, %v3006_v6  ;;  %v3009_v10 = vadd.f32 %v5693_v63, %v2794_v39 }
 0x29b   : > { %v7169_v51 = vmax.f32 %v3071_v36, %v3104_v28  ;;  %v2959_v27 = vpop.f32.mrf.mxu1  ;;  %v3075_v16 = vmax.f32 %v3060_v20, 0.0  ;;  %v7691_v28 = vmov 0.0  }
 0x29c   : > { %v3100_v32 = vsel %vm2404_vm1, %v3098_v33, %v3099_v50  ;;  %v3102_v42 = vsel %vm2404_vm1, %v3099_v50, %v3101_v18  ;;  %v3073_v58 = vmax.f32 %v3058_v22, 0.0  ;;  %v3061_v5 = vadd.f32 %v7160_v8, %v3009_v10  ;;  %v6183_v33 = vld [vmem:[%s7672_s5 + $0x130] sm:$0xff]  }
 0x29d   : > { %v3136_v19 = vmax.f32 %v3069_v24, %v3100_v32  ;;  %v3137_v54 = vmax.f32 %v3070_v62, %v3102_v42  ;;  %v3007_v3 = vadd.f32 %v2959_v27, %v2792_v56  ;;  %v5696_v55 = vpop.f32.mrf.mxu1  ;;  %v3109_v1 = vrot.slane %v3075_v16, 1 }
 0x29e   : > { %v3105_v40 = vrot.slane %v3073_v58, 1  ;;  %v3012_v37 = vadd.f32 %v5696_v55, %v2797_v52  ;;  %v3076_v26 = vmax.f32 %v3061_v5, 0.0  ;;  %v2585_v56 = vadd.f32 %v2561_v53, %v7132_v23  ;;  %v6181_v23 = vld [vmem:[%s7672_s5 + $0x138] sm:$0xff]  }
 0x29f   : > { %v3161_v14 = vmax.f32 %v3136_v19, %v7169_v51  ;;  %v3059_v39 = vadd.f32 %v7160_v8, %v3007_v3  ;;  %v2972_v49 = vpop.f32.mrf.mxu1 }
 0x2a0   : > { %v3106_v45 = vsel %vm2404_vm1, %v3103_v4, %v3105_v40  ;;  %v3064_v21 = vadd.f32 %v7160_v8, %v3012_v37  ;;  %v3010_v29 = vadd.f32 %v2972_v49, %v2795_v25  ;;  %v3111_v43 = vrot.slane %v3076_v26, 1 }
 0x2a1   : > { %v3139_v38 = vmax.f32 %v3072_v0, %v3106_v45  ;;  %v3074_v15 = vmax.f32 %v3059_v39, 0.0  ;;  %v5697_v61 = vpop.f32.mrf.mxu1  ;;  %v2800_v62 = vadd.f32 %v2776_v12, %v2585_v56 }
 0x2a2   : > { %v7180_v52 = vadd.f32 %v7160_v8, %v3010_v29  ;;  %v3013_v13 = vadd.f32 %v5697_v61, %v7146_v7  ;;  %v3112_v34 = vsel %vm2404_vm1, %v3109_v1, %v3111_v43  ;;  %v3079_v44 = vmax.f32 %v3064_v21, 0.0 }
 0x2a3   : > { %v3162_v30 = vmax.f32 %v3137_v54, %v3139_v38  ;;  %v3107_v59 = vrot.slane %v3074_v15, 1  ;;  %v2975_v60 = vpop.f32.mrf.mxu1  ;;  %v7184_v57 = vmax.f32 %v3075_v16, %v3112_v34  ;;  %v6186_v34 = vld [vmem:[%s7672_s5 + $0x1b0] sm:$0xff]  }
 0x2a4   : > { %v3077_v25 = vmax.f32 %v7180_v52, 0.0  ;;  %v7188_v41 = vadd.f32 %v7160_v8, %v3013_v13  ;;  %v3011_v36 = vadd.f32 %v2975_v60, %v7149_v47  ;;  %v3117_v48 = vrot.slane %v3079_v44, 1 }
 0x2a5   : > { %v3108_v53 = vsel %vm2404_vm1, %v3105_v40, %v3107_v59  ;;  %v3110_v7 = vsel %vm2404_vm1, %v3107_v59, %v3109_v1  ;;  %v5700_v46 = vpop.f32.mrf.mxu1  ;;  %v7196_v31 = vpack.c.bf16 %v3162_v30, %v3161_v14  ;;  %v6185_v14 = vld [vmem:[%s7672_s5 + $0x128] sm:$0xff]  }
 0x2a6   : > { %v3140_v9 = vmax.f32 %v3073_v58, %v3108_v53  ;;  %v3141_v24 = vmax.f32 %v3074_v15, %v3110_v7  ;;  %v3113_v0 = vrot.slane %v3077_v25, 1  ;;  %v3080_v2 = vmax.f32 %v7188_v41, 0.0 }
 0x2a7   : > { %v3063_v18 = vadd.f32 %v7160_v8, %v3011_v36  ;;  %v3016_v35 = vadd.f32 %v5700_v46, %v7152_v11  ;;  %v2988_v4 = vpop.f32.mrf.mxu1  ;;  %5747 = vmatmul.mubr.bf16.vlgmr.msra.gmra.mxu1 %v7196_v31  ;;  %v3684_v16 = vrot.slane %v7196_v31, 1 }
 0x2a8   : > { %v3165_v47 = vmax.f32 %v3140_v9, %v7184_v57  ;;  %v3114_v20 = vsel %vm2404_vm1, %v3111_v43, %v3113_v0  ;;  %v3119_v6 = vrot.slane %v3080_v2, 1  ;;  %v3014_v63 = vadd.f32 %v2988_v4, %v7155_v17  ;;  %5787 = vmatpush3.bf16.msra.mxu1 %v6181_v23  ;;  %5750 = vmatprep.mubr.msk.bf16.mxu1 %vm6309_vm2, %v7691_v28 }
 0x2a9   : > { %v3143_v11 = vmax.f32 %v3076_v26, %v3114_v20  ;;  %v3078_v50 = vmax.f32 %v3063_v18, 0.0  ;;  %v3068_v22 = vadd.f32 %v7160_v8, %v3016_v35  ;;  %v5701_v10 = vpop.f32.mrf.mxu1  ;;  %5788 = vmatprep.subr.bf16.mxu1 %v7691_v28  ;;  %v3163_v27 = vmax.f32 %v7169_v51, %v3140_v9  ;;  %v6184_v51 = vld [vmem:[%s7672_s5 + $0x1b8] sm:$0xff]  }
 0x2aa   : > { %v3120_v17 = vsel %vm2404_vm1, %v3117_v48, %v3119_v6  ;;  %v3066_v32 = vadd.f32 %v7160_v8, %v3014_v63  ;;  %v3164_v42 = vmax.f32 %v3139_v38, %v3141_v24  ;;  %v4065_v26 = vrot.slane %v7196_v31, 2 }
 0x2ab   : > { %v3166_v58 = vmax.f32 %v3141_v24, %v3143_v11  ;;  %v7218_v19 = vmax.f32 %v3079_v44, %v3120_v17  ;;  %v3115_v54 = vrot.slane %v3078_v50, 1  ;;  %v3083_v5 = vmax.f32 %v3068_v22, 0.0  ;;  %v2991_v3 = vpop.f32.mrf.mxu1 }
 0x2ac   : > { %v7220_v55 = vmax.f32 %v3066_v32, 0.0  ;;  %v3015_v40 = vadd.f32 %v2991_v3, %v2800_v62  ;;  %5789 = vmatpush3.bf16.msra.mxu1 %v6183_v33  ;;  %v3175_v37 = vpack.c.bf16 %v3164_v42, %v3163_v27 }
 0x2ad   : > { %v3118_v39 = vsel %vm2404_vm1, %v3115_v54, %v3117_v48  ;;  %v3153_v49 = vrot.slane %v3083_v5, 1  ;;  %5790 = vmatprep.subr.bf16.mxu1 %v7691_v28  ;;  %v3176_v45 = vpack.c.bf16 %v3166_v58, %v3165_v47  ;;  %v3116_v21 = vsel %vm2404_vm1, %v3113_v0, %v3115_v54  ;;  %v6188_v0 = vld [vmem:[%s7672_s5 + $0x1a8] sm:$0xff]  }
 0x2ae   : > { %v3145_v29 = vmax.f32 %v3078_v50, %v3118_v39  ;;  %v3121_v1 = vrot.slane %v7220_v55, 1  ;;  %v3067_v38 = vadd.f32 %v7160_v8, %v3015_v40  ;;  %v3685_v43 = vrot.slane %v3175_v37, 1  ;;  %v6187_v8 = vld [vmem:[%s7672_s5 + $0x120] sm:$0xff]   ;;  %v6191_v50 = vld [vmem:[%s7672_s5 + $0x110] sm:$0xff]   ;;  %v6193_v58 = vld [vmem:[%s7672_s5 + $0x108] sm:$0xff]  }
 0x2af   : > { %v3160_v15 = vmax.f32 %v3083_v5, %v3153_v49  ;;  %5719 = vmatmul.mubr.bf16.vlgmr.msra.gmra.mxu0 %v3176_v45  ;;  %5751 = vmatmul.mubr.bf16.gmra.mxu1 %v3175_v37  ;;  %v4066_v61 = vrot.slane %v3175_v37, 2  ;;  %v3144_v56 = vmax.f32 %v3077_v25, %v3116_v21  ;;  %v7234_v52 = vrot.slane %v3176_v45, 1  ;;  %v6196_v39 = vld [vmem:[%s7672_s5 + $0x188] sm:$0xff]   ;;  %v6199_v21 = vld [vmem:[%s7672_s5 + $0x1f0] sm:$0xff]  }
 0x2b0   : > { %v3122_v13 = vsel %vm2404_vm1, %v3119_v6, %v3121_v1  ;;  %v3082_v30 = vmax.f32 %v3067_v38, 0.0  ;;  %5759 = vmatpush3.bf16.msra.mxu0 %v6184_v51  ;;  %5791 = vmatpush3.bf16.msra.mxu1 %v6185_v14  ;;  %v3168_v59 = vmax.f32 %v3143_v11, %v3145_v29  ;;  %v3148_v44 = vmax.f32 %v7220_v55, %v3121_v1  ;;  %v6190_v11 = vld [vmem:[%s7672_s5 + $0x1a0] sm:$0xff]   ;;  %v6194_v14 = vld [vmem:[%s7672_s5 + $0x190] sm:$0xff]  }
 0x2b1   : > { %5760 = vmatprep.subr.bf16.mxu0 %v7691_v28  ;;  %5792 = vmatprep.subr.bf16.mxu1 %v7691_v28  ;;  %v3167_v60 = vmax.f32 %v7184_v57, %v3144_v56  ;;  %v3147_v25 = vmax.f32 %v3080_v2, %v3122_v13  ;;  %v3169_v23 = vmax.f32 %v3144_v56, %v7218_v19  ;;  %v7250_v53 = vrot.slane %v3176_v45, 2  ;;  %v6189_v2 = vld [vmem:[%s7672_s5 + $0x118] sm:$0xff]   ;;  %v6202_v38 = vld [vmem:[%s7672_s5 + $0x70] sm:$0xff]   ;;  %v6206_v56 = vld [vmem:[%s7672_s5 + $0x60] sm:$0xff]  }
 0x2b2   : > { %v3151_v7 = vrot.slane %v3082_v30, 1  ;;  %5722 = vmatprep.mubr.msk.bf16.mxu0 %vm6309_vm2, %v7691_v28  ;;  %5754 = vmatprep.mubr.msk.bf16.mxu1 %vm6309_vm2, %v7691_v28  ;;  %v3173_v36 = vmax.f32 %v3148_v44, %v3160_v15  ;;  %v7257_v46 = vsel %vm2404_vm1, %v3684_v16, %v3685_v43  ;;  %v7261_v57 = vsel %vm2404_vm1, %v3685_v43, %v7234_v52  ;;  %v6192_v16 = vld [vmem:[%s7672_s5 + $0x198] sm:$0xff]   ;;  %v6203_v43 = vld [vmem:[%s7672_s5 + $0x1e0] sm:$0xff]   ;;  %v6204_v15 = vld [vmem:[%s7672_s5 + $0x68] sm:$0xff]  }
 0x2b3   : > { %v3177_v41 = vpack.c.bf16 %v3168_v59, %v3167_v60  ;;  %v3170_v31 = vmax.f32 %v3145_v29, %v3147_v25  ;;  %v7264_v12 = vsel %vm3955_vm3, %v4065_v26, %v4066_v61  ;;  %v7268_v9 = vsel %vm3955_vm3, %v4066_v61, %v7250_v53  ;;  %v6195_v26 = vld [vmem:[%s7672_s5 + $0x100] sm:$0xff]   ;;  %v6200_v29 = vld [vmem:[%s7672_s5 + $0x78] sm:$0xff]   ;;  %v6207_v13 = vld [vmem:[%s7672_s5 + $0x1d0] sm:$0xff]  }
 0x2b4   : > { %v3154_v24 = vsel %vm2404_vm1, %v3151_v7, %v3153_v49  ;;  %5761 = vmatpush3.bf16.msra.mxu0 %v6186_v34  ;;  %5793 = vmatpush3.bf16.msra.mxu1 %v6187_v8  ;;  %v3152_v48 = vsel %vm2404_vm1, %v3121_v1, %v3151_v7  ;;  %v7299_v10 = vpack.c.bf16 %v3173_v36, %v3173_v36  ;;  %v6197_v49 = vld [vmem:[%s7672_s5 + $0x1f8] sm:$0xff]   ;;  %v6201_v1 = vld [vmem:[%s7672_s5 + $0x1e8] sm:$0xff]   ;;  %v6210_v8 = vld [vmem:[%s7672_s5 + $0x50] sm:$0xff]  }
 0x2b5   : > { %v3159_v18 = vmax.f32 %v3082_v30, %v3154_v24  ;;  %5762 = vmatprep.subr.bf16.mxu0 %v7691_v28  ;;  %5794 = vmatprep.subr.bf16.mxu1 %v7691_v28  ;;  %v3574_v35 = vrot.slane %v3177_v41, 1  ;;  %v3957_v4 = vrot.slane %v3177_v41, 2  ;;  %v7280_v62 = vpack.c.bf16 %v3170_v31, %v3169_v23  ;;  %v6205_v61 = vld [vmem:[%s7672_s5 + $0x1d8] sm:$0xff]   ;;  %v6209_v34 = vld [vmem:[%s7672_s5 + $0x1c8] sm:$0xff]   ;;  %v6211_v59 = vld [vmem:[%s7672_s5 + $0x1c0] sm:$0xff]  }
 0x2b6   : > { %v3158_v47 = vmax.f32 %v7220_v55, %v3152_v48  ;;  %v3813_v5 = vrot.slane %v7299_v10, 1  ;;  %v4192_v3 = vrot.slane %v7299_v10, 2  ;;  %v6208_v30 = vld [vmem:[%s7672_s5 + $0x58] sm:$0xff]   ;;  %v6212_v44 = vld [vmem:[%s7672_s5 + $0x48] sm:$0xff]   ;;  %v6215_v23 = vld [vmem:[%s7672_s5 + $0xb0] sm:$0xff]  }
 0x2b7   : > { %5723 = vmatmul.mubr.bf16.gmra.mxu0 %v3177_v41  ;;  %5755 = vmatmul.mubr.bf16.gmra.mxu1 %v3176_v45  ;;  %v3575_v20 = vsel %vm2404_vm1, %v7234_v52, %v3574_v35  ;;  %v7286_v6 = vrot.slane %v7280_v62, 1  ;;  %v3172_v63 = vmax.f32 %v3147_v25, %v3159_v18  ;;  %v7290_v33 = vsel %vm3955_vm3, %v7250_v53, %v3957_v4  ;;  %v6198_v45 = vld [vmem:[%s7672_s5 + $0x180] sm:$0xff]   ;;  %v6213_v60 = vld [vmem:[%s7672_s5 + $0xb8] sm:$0xff]   ;;  %v6217_v36 = vld [vmem:[%s7672_s5 + $0xa8] sm:$0xff]  }
 0x2b8   : > { %5763 = vmatpush3.bf16.msra.mxu0 %v6188_v0  ;;  %5795 = vmatpush3.bf16.msra.mxu1 %v6189_v2  ;;  %v3171_v22 = vmax.f32 %v7218_v19, %v3158_v47  ;;  %v7302_v27 = vrot.slane %v7280_v62, 2  ;;  %v6214_v25 = vld [vmem:[%s7672_s5 + $0x40] sm:$0xff]   ;;  %v6216_v7 = vld [vmem:[%s7672_s5 + $0x178] sm:$0xff]   ;;  %v6218_v41 = vld [vmem:[%s7672_s5 + $0x170] sm:$0xff]  }
 0x2b9   : > { %5764 = vmatprep.subr.bf16.mxu0 %v7691_v28  ;;  %5796 = vmatprep.subr.bf16.mxu1 %v7691_v28  ;;  %v3577_v17 = vsel %vm2404_vm1, %v3574_v35, %v7286_v6  ;;  %v6219_v31 = vld [vmem:[%s7672_s5 + $0xa0] sm:$0xff]   ;;  %v6221_v24 = vld [vmem:[%s7672_s5 + $0x98] sm:$0xff]   ;;  %v6223_v2 = vld [vmem:[%s7672_s5 + $0x90] sm:$0xff]  }
 0x2ba   : > { %5726 = vmatprep.mubr.msk.bf16.mxu0 %vm6309_vm2, %v7691_v28  ;;  %5802 = vmatprep.mubr.msk.bf16.mxu1 %vm6309_vm2, %v7691_v28  ;;  %v3179_v32 = vpack.c.bf16 %v3172_v63, %v3171_v22  ;;  %v7314_v42 = vsel %vm3955_vm3, %v3957_v4, %v7302_v27  ;;  %v6222_v0 = vld [vmem:[%s7672_s5 + $0x160] sm:$0xff]   ;;  %v6225_v48 = vld [vmem:[%s7672_s5 + $0x88] sm:$0xff]   ;;  %v6226_v18 = vld [vmem:[%s7672_s5 + $0x150] sm:$0xff]  }
 0x2bb   : > { %v6227_v35 = vld [vmem:[%s7672_s5 + $0x80] sm:$0xff]   ;;  %v6232_v47 = vld [vmem:[%s7672_s5 + $0x228] sm:$0xff]  }
 0x2bc   : > { %5765 = vmatpush3.bf16.msra.mxu0 %v6190_v11  ;;  %5797 = vmatpush3.bf16.msra.mxu1 %v6191_v50  ;;  %v3811_v19 = vrot.slane %v3179_v32, 1  ;;  %v4190_v54 = vrot.slane %v3179_v32, 2  ;;  %v6229_v4 = vld [vmem:[%s7672_s5 + $0x140] sm:$0xff]  }
 0x2bd   : > { %5766 = vmatprep.subr.bf16.mxu0 %v7691_v28  ;;  %5798 = vmatprep.subr.bf16.mxu1 %v7691_v28  ;;  %v6237_v63 = vld [vmem:[%s7672_s5 + $0x200] sm:$0xff]  }
 0x2be   : > { %v7328_v55 = vsel %vm2404_vm1, %v7286_v6, %v3811_v19  ;;  %v7333_v40 = vsel %vm2404_vm1, %v3811_v19, %v3813_v5  ;;  %v7337_v37 = vsel %vm3955_vm3, %v7302_v27, %v4190_v54  ;;  %v7342_v51 = vsel %vm3955_vm3, %v4190_v54, %v4192_v3 }
 0x2bf   : > { %5727 = vmatmul.mubr.bf16.gmra.mxu0 %v7280_v62 }
 0x2c0   : > { %5767 = vmatpush3.bf16.msra.mxu0 %v6192_v16  ;;  %5799 = vmatpush3.bf16.msra.mxu1 %v6193_v58  ;;  %v6238_v58 = vld [vmem:[%s7674_s7 + $0x38] sm:$0xff]  }
 0x2c1   : > { %5768 = vmatprep.subr.bf16.mxu0 %v7691_v28  ;;  %5800 = vmatprep.subr.bf16.mxu1 %v7691_v28 }
 0x2c2   : > { %5774 = vmatprep.mubr.msk.bf16.mxu0 %vm6309_vm2, %v7691_v28 }
 0x2c4   : > { %5769 = vmatpush3.bf16.msra.mxu0 %v6194_v14  ;;  %5801 = vmatpush3.bf16.msra.mxu1 %v6195_v26  ;;  %v6240_v14 = vld [vmem:[%s7674_s7 + $0x28] sm:$0xff]  }
 0x2c5   : > { %5770 = vmatprep.subr.bf16.mxu0 %v7691_v28  ;;  %5842 = vmatprep.subr.bf16.mxu1 %v7691_v28 }
 0x2c7   : > { %5803 = vmatmul.mubr.bf16.vlgmr.msra.gmra.mxu1 %v3575_v20  ;;  %v6234_v20 = vld [vmem:[%s7672_s5 + $0x218] sm:$0xff]  }
 0x2c8   : > { %5771 = vmatpush3.bf16.msra.mxu0 %v6196_v39  ;;  %5843 = vmatpush3.bf16.msra.mxu1 %v6197_v49  ;;  %v6241_v49 = vld [vmem:[%s7674_s7 + $0x20] sm:$0xff]  }
 0x2c9   : > { %5772 = vmatprep.subr.bf16.mxu0 %v7691_v28  ;;  %5844 = vmatprep.subr.bf16.mxu1 %v7691_v28 }
 0x2ca   : > { %5806 = vmatprep.mubr.msk.bf16.mxu1 %vm6309_vm2, %v7691_v28 }
 0x2cc   : > { %5773 = vmatpush3.bf16.msra.mxu0 %v6198_v45  ;;  %5845 = vmatpush3.bf16.msra.mxu1 %v6199_v21 }
 0x2cd   : > { %5814 = vmatprep.subr.bf16.mxu0 %v7691_v28  ;;  %5846 = vmatprep.subr.bf16.mxu1 %v7691_v28 }
 0x2cf   : > { %5775 = vmatmul.mubr.bf16.vlgmr.msra.gmra.mxu0 %v7280_v62  ;;  %5807 = vmatmul.mubr.bf16.gmra.mxu1 %v3577_v17  ;;  %v6230_v62 = vld [vmem:[%s7672_s5 + $0x238] sm:$0xff]  }
 0x2d0   : > { %5815 = vmatpush3.bf16.msra.mxu0 %v6200_v29  ;;  %5847 = vmatpush3.bf16.msra.mxu1 %v6201_v1 }
 0x2d1   : > { %5816 = vmatprep.subr.bf16.mxu0 %v7691_v28  ;;  %5848 = vmatprep.subr.bf16.mxu1 %v7691_v28 }
 0x2d2   : > { %5778 = vmatprep.mubr.msk.bf16.mxu0 %vm6309_vm2, %v7691_v28  ;;  %5810 = vmatprep.mubr.msk.bf16.mxu1 %vm6309_vm2, %v7691_v28 }
 0x2d4   : > { %5817 = vmatpush3.bf16.msra.mxu0 %v6202_v38  ;;  %5849 = vmatpush3.bf16.msra.mxu1 %v6203_v43  ;;  %v6242_v43 = vld [vmem:[%s7674_s7 + $0x18] sm:$0xff]  }
 0x2d5   : > { %5818 = vmatprep.subr.bf16.mxu0 %v7691_v28  ;;  %5850 = vmatprep.subr.bf16.mxu1 %v7691_v28 }
 0x2d7   : > { %5779 = vmatmul.mubr.bf16.gmra.mxu0 %v3179_v32  ;;  %5811 = vmatmul.mubr.bf16.gmra.mxu1 %v7286_v6  ;;  %v6236_v6 = vld [vmem:[%s7672_s5 + $0x208] sm:$0xff]  }
 0x2d8   : > { %5819 = vmatpush3.bf16.msra.mxu0 %v6204_v15  ;;  %5851 = vmatpush3.bf16.msra.mxu1 %v6205_v61 }
 0x2d9   : > { %5820 = vmatprep.subr.bf16.mxu0 %v7691_v28  ;;  %5852 = vmatprep.subr.bf16.mxu1 %v7691_v28 }
 0x2da   : > { %5782 = vmatprep.mubr.msk.bf16.mxu0 %vm6309_vm2, %v7691_v28  ;;  %5858 = vmatprep.mubr.msk.bf16.mxu1 %vm6309_vm2, %v7691_v28 }
 0x2dc   : > { %5821 = vmatpush3.bf16.msra.mxu0 %v6206_v56  ;;  %5853 = vmatpush3.bf16.msra.mxu1 %v6207_v13  ;;  %v6243_v56 = vld [vmem:[%s7674_s7 + $0x10] sm:$0xff]  }
 0x2dd   : > { %5822 = vmatprep.subr.bf16.mxu0 %v7691_v28  ;;  %5854 = vmatprep.subr.bf16.mxu1 %v7691_v28 }
 0x2df   : > { %5783 = vmatmul.mubr.bf16.gmra.mxu0 %v7299_v10  ;;  %v6239_v10 = vld [vmem:[%s7674_s7 + $0x30] sm:$0xff]  }
 0x2e0   : > { %5823 = vmatpush3.bf16.msra.mxu0 %v6208_v30  ;;  %5855 = vmatpush3.bf16.msra.mxu1 %v6209_v34  ;;  %v6244_v34 = vld [vmem:[%s7674_s7 + $0x8] sm:$0xff]  }
 0x2e1   : > { %5824 = vmatprep.subr.bf16.mxu0 %v7691_v28  ;;  %5856 = vmatprep.subr.bf16.mxu1 %v7691_v28 }
 0x2e2   : > { %5830 = vmatprep.mubr.msk.bf16.mxu0 %vm6309_vm2, %v7691_v28 }
 0x2e4   : > { %5825 = vmatpush3.bf16.msra.mxu0 %v6210_v8  ;;  %5857 = vmatpush3.bf16.msra.mxu1 %v6211_v59  ;;  %v6245_v59 = vld [vmem:[%s7674_s7] sm:$0xff]  }
 0x2e5   : > { %5826 = vmatprep.subr.bf16.mxu0 %v7691_v28  ;;  %5898 = vmatprep.subr.bf16.mxu1 %v7691_v28 }
 0x2e7   : > { %5859 = vmatmul.mubr.bf16.vlgmr.msra.gmra.mxu1 %v7328_v55 }
 0x2e8   : > { %5827 = vmatpush3.bf16.msra.mxu0 %v6212_v44  ;;  %5899 = vmatpush3.bf16.msra.mxu1 %v6213_v60 }
 0x2e9   : > { %5828 = vmatprep.subr.bf16.mxu0 %v7691_v28  ;;  %5900 = vmatprep.subr.bf16.mxu1 %v7691_v28 }
 0x2ea   : > { %5862 = vmatprep.mubr.msk.bf16.mxu1 %vm6309_vm2, %v7691_v28 }
 0x2ec   : > { %5829 = vmatpush3.bf16.msra.mxu0 %v6214_v25  ;;  %5901 = vmatpush3.bf16.msra.mxu1 %v6215_v23 }
 0x2ed   : > { %5870 = vmatprep.subr.bf16.mxu0 %v7691_v28  ;;  %5902 = vmatprep.subr.bf16.mxu1 %v7691_v28 }
 0x2ef   : > { %5831 = vmatmul.mubr.bf16.vlgmr.msra.gmra.mxu0 %v7257_v46  ;;  %5863 = vmatmul.mubr.bf16.gmra.mxu1 %v7333_v40  ;;  %v6220_v46 = vld [vmem:[%s7672_s5 + $0x168] sm:$0xff]  }
 0x2f0   : > { %5871 = vmatpush3.bf16.msra.mxu0 %v6216_v7  ;;  %5903 = vmatpush3.bf16.msra.mxu1 %v6217_v36 }
 0x2f1   : > { %5872 = vmatprep.subr.bf16.mxu0 %v7691_v28  ;;  %5904 = vmatprep.subr.bf16.mxu1 %v7691_v28 }
 0x2f2   : > { %5834 = vmatprep.mubr.msk.bf16.mxu0 %vm6309_vm2, %v7691_v28  ;;  %5866 = vmatprep.mubr.msk.bf16.mxu1 %vm6309_vm2, %v7691_v28 }
 0x2f4   : > { %5873 = vmatpush3.bf16.msra.mxu0 %v6218_v41  ;;  %5905 = vmatpush3.bf16.msra.mxu1 %v6219_v31 }
 0x2f5   : > { %5874 = vmatprep.subr.bf16.mxu0 %v7691_v28  ;;  %5906 = vmatprep.subr.bf16.mxu1 %v7691_v28 }
 0x2f7   : > { %5835 = vmatmul.mubr.bf16.gmra.mxu0 %v7261_v57  ;;  %5867 = vmatmul.mubr.bf16.gmra.mxu1 %v3813_v5  ;;  %v6224_v57 = vld [vmem:[%s7672_s5 + $0x158] sm:$0xff]  }
 0x2f8   : > { %5875 = vmatpush3.bf16.msra.mxu0 %v6220_v46  ;;  %5907 = vmatpush3.bf16.msra.mxu1 %v6221_v24 }
 0x2f9   : > { %5876 = vmatprep.subr.bf16.mxu0 %v7691_v28  ;;  %5908 = vmatprep.subr.bf16.mxu1 %v7691_v28 }
 0x2fa   : > { %5838 = vmatprep.mubr.msk.bf16.mxu0 %vm6309_vm2, %v7691_v28  ;;  %5914 = vmatprep.mubr.msk.bf16.mxu1 %vm6309_vm2, %v7691_v28 }
 0x2fc   : > { %5877 = vmatpush3.bf16.msra.mxu0 %v6222_v0  ;;  %5909 = vmatpush3.bf16.msra.mxu1 %v6223_v2 }
 0x2fd   : > { %5878 = vmatprep.subr.bf16.mxu0 %v7691_v28  ;;  %5910 = vmatprep.subr.bf16.mxu1 %v7691_v28 }
 0x2ff   : > { %5839 = vmatmul.mubr.bf16.gmra.mxu0 %v7234_v52  ;;  %v6228_v52 = vld [vmem:[%s7672_s5 + $0x148] sm:$0xff]  }
 0x300   : > { %5879 = vmatpush3.bf16.msra.mxu0 %v6224_v57  ;;  %5911 = vmatpush3.bf16.msra.mxu1 %v6225_v48 }
 0x301   : > { %5880 = vmatprep.subr.bf16.mxu0 %v7691_v28  ;;  %5912 = vmatprep.subr.bf16.mxu1 %v7691_v28 }
 0x302   : > { %5886 = vmatprep.mubr.msk.bf16.mxu0 %vm6309_vm2, %v7691_v28 }
 0x304   : > { %5881 = vmatpush3.bf16.msra.mxu0 %v6226_v18  ;;  %5913 = vmatpush3.bf16.msra.mxu1 %v6227_v35 }
 0x305   : > { %5882 = vmatprep.subr.bf16.mxu0 %v7691_v28  ;;  %5954 = vmatprep.subr.bf16.mxu1 %v7691_v28 }
 0x307   : > { %5915 = vmatmul.mubr.bf16.vlgmr.msra.gmra.mxu1 %v7264_v12  ;;  %v6231_v12 = vld [vmem:[%s7672_s5 + $0x230] sm:$0xff]  }
 0x308   : > { %5883 = vmatpush3.bf16.msra.mxu0 %v6228_v52  ;;  %5918 = vmatprep.mubr.msk.bf16.mxu1 %vm6309_vm2, %v7691_v28 }
 0x309   : > { %5884 = vmatprep.subr.bf16.mxu0 %v7691_v28  ;;  %5955 = vmatpush3.bf16.msra.mxu1 %v6238_v58 }
 0x30a   : > { %5956 = vmatprep.subr.bf16.mxu1 %v7691_v28 }
 0x30c   : > { %5885 = vmatpush3.bf16.msra.mxu0 %v6229_v4 }
 0x30d   : > { %5926 = vmatprep.subr.bf16.mxu0 %v7691_v28  ;;  %5957 = vmatpush3.bf16.msra.mxu1 %v6239_v10 }
 0x30e   : > { %5958 = vmatprep.subr.bf16.mxu1 %v7691_v28 }
 0x30f   : > { %5887 = vmatmul.mubr.bf16.vlgmr.msra.gmra.mxu0 %v7290_v33  ;;  %5919 = vmatmul.mubr.bf16.gmra.mxu1 %v7268_v9  ;;  %v6233_v9 = vld [vmem:[%s7672_s5 + $0x220] sm:$0xff]  }
 0x310   : > { %5927 = vmatpush3.bf16.msra.mxu0 %v6230_v62  ;;  %5890 = vmatprep.mubr.msk.bf16.mxu0 %vm6309_vm2, %v7691_v28 }
 0x311   : > { %5928 = vmatprep.subr.bf16.mxu0 %v7691_v28  ;;  %5922 = vmatprep.mubr.msk.bf16.mxu1 %vm6309_vm2, %v7691_v28 }
 0x312   : > { %5959 = vmatpush3.bf16.msra.mxu1 %v6240_v14 }
 0x313   : > { %5960 = vmatprep.subr.bf16.mxu1 %v7691_v28 }
 0x314   : > { %5929 = vmatpush3.bf16.msra.mxu0 %v6231_v12 }
 0x315   : > { %5930 = vmatprep.subr.bf16.mxu0 %v7691_v28 }
 0x316   : > { %5961 = vmatpush3.bf16.msra.mxu1 %v6241_v49 }
 0x317   : > { %5891 = vmatmul.mubr.bf16.gmra.mxu0 %v7314_v42  ;;  %5923 = vmatmul.mubr.bf16.gmra.mxu1 %v7250_v53  ;;  %v6235_v53 = vld [vmem:[%s7672_s5 + $0x210] sm:$0xff]  }
 0x318   : > { %5931 = vmatpush3.bf16.msra.mxu0 %v6232_v47  ;;  %5894 = vmatprep.mubr.msk.bf16.mxu0 %vm6309_vm2, %v7691_v28 }
 0x319   : > { %5932 = vmatprep.subr.bf16.mxu0 %v7691_v28  ;;  %5970 = vmatprep.mubr.msk.bf16.mxu1 %vm6309_vm2, %v7691_v28 }
 0x31a   : > { %5962 = vmatprep.subr.bf16.mxu1 %v7691_v28 }
 0x31b   : > { %5963 = vmatpush3.bf16.msra.mxu1 %v6242_v43 }
 0x31c   : > { %5933 = vmatpush3.bf16.msra.mxu0 %v6233_v9  ;;  %5964 = vmatprep.subr.bf16.mxu1 %v7691_v28 }
 0x31d   : > { %5934 = vmatprep.subr.bf16.mxu0 %v7691_v28 }
 0x31f   : > { %5895 = vmatmul.mubr.bf16.gmra.mxu0 %v7302_v27  ;;  %5965 = vmatpush3.bf16.msra.mxu1 %v6243_v56 }
 0x320   : > { %5935 = vmatpush3.bf16.msra.mxu0 %v6234_v20  ;;  %5942 = vmatprep.mubr.msk.bf16.mxu0 %vm6309_vm2, %v7691_v28 }
 0x321   : > { %5936 = vmatprep.subr.bf16.mxu0 %v7691_v28  ;;  %5966 = vmatprep.subr.bf16.mxu1 %v7691_v28 }
 0x323   : > { %5967 = vmatpush3.bf16.msra.mxu1 %v6244_v34 }
 0x324   : > { %5937 = vmatpush3.bf16.msra.mxu0 %v6235_v53  ;;  %5968 = vmatprep.subr.bf16.mxu1 %v7691_v28 }
 0x325   : > { %5938 = vmatprep.subr.bf16.mxu0 %v7691_v28 }
 0x327   : > { %5969 = vmatpush3.bf16.msra.mxu1 %v6245_v59 }
 0x328   : > { %5939 = vmatpush3.bf16.msra.mxu0 %v6236_v6 }
 0x329   : > { %5940 = vmatprep.subr.bf16.mxu0 %v7691_v28 }
 0x32c   : > { %5941 = vmatpush3.bf16.msra.mxu0 %v6237_v63 }
 0x32f   : > { %5943 = vmatmul.mubr.bf16.vlgmr.msra.gmra.mxu0 %v7337_v37 }
 0x330   : > { %5946 = vmatprep.mubr.msk.bf16.mxu0 %vm6309_vm2, %v7691_v28 }
 0x337   : > { %5947 = vmatmul.mubr.bf16.gmra.mxu0 %v7342_v51 }
 0x338   : > { %5950 = vmatprep.mubr.msk.bf16.mxu0 %vm6309_vm2, %v7691_v28 }
 0x33f   : > { %5951 = vmatmul.mubr.bf16.gmra.mxu0 %v4192_v3 }
 0x367   : > { %v3397_v33 = vpop.f32.mrf.mxu1 }
 0x369   : > { %v5748_v11 = vpop.f32.mrf.mxu1 }
 0x36b   : > { %v3400_v50 = vpop.f32.mrf.mxu1 }
 0x36d   : > { %v5749_v22 = vpop.f32.mrf.mxu1 }
 0x36f   : > { %v3296_v27 = vpop.f32.mrf.mxu0  ;;  %v3404_v17 = vpop.f32.mrf.mxu1 }
 0x370   : > { %v3398_v32 = vadd.f32 %v3397_v33, %v3296_v27 }
 0x371   : > { %v5720_v42 = vpop.f32.mrf.mxu0  ;;  %v5752_v16 = vpop.f32.mrf.mxu1 }
 0x373   : > { %v3299_v19 = vpop.f32.mrf.mxu0  ;;  %v3406_v54 = vpop.f32.mrf.mxu1 }
 0x375   : > { %v5721_v5 = vpop.f32.mrf.mxu0  ;;  %v5753_v55 = vpop.f32.mrf.mxu1 }
 0x377   : > { %v3303_v3 = vpop.f32.mrf.mxu0  ;;  %v3410_v40 = vpop.f32.mrf.mxu1 }
 0x379   : > { %v5724_v37 = vpop.f32.mrf.mxu0  ;;  %v5756_v51 = vpop.f32.mrf.mxu1 }
 0x37b   : > { %v3305_v26 = vpop.f32.mrf.mxu0  ;;  %v3413_v39 = vpop.f32.mrf.mxu1 }
 0x37d   : > { %v5725_v45 = vpop.f32.mrf.mxu0  ;;  %v5757_v21 = vpop.f32.mrf.mxu1 }
 0x37f   : > { %v3309_v29 = vpop.f32.mrf.mxu0 }
 0x380   : > { %v3411_v1 = vadd.f32 %v3410_v40, %v3309_v29 }
 0x381   : > { %v5728_v38 = vpop.f32.mrf.mxu0 }
 0x383   : > { %v3312_v15 = vpop.f32.mrf.mxu0 }
 0x385   : > { %v5729_v61 = vpop.f32.mrf.mxu0 }
 0x387   : > { %v3663_v13 = vpop.f32.mrf.mxu1 }
 0x389   : > { %v5804_v30 = vpop.f32.mrf.mxu1 }
 0x38b   : > { %v3666_v8 = vpop.f32.mrf.mxu1 }
 0x38d   : > { %v5805_v44 = vpop.f32.mrf.mxu1 }
 0x38f   : > { %v3515_v60 = vpop.f32.mrf.mxu0  ;;  %v3670_v25 = vpop.f32.mrf.mxu1 }
 0x390   : > { %v3534_v23 = vadd.f32 %v3515_v60, %v3398_v32 }
 0x391   : > { %v5776_v7 = vpop.f32.mrf.mxu0  ;;  %v5808_v36 = vpop.f32.mrf.mxu1 }
 0x393   : > { %v3518_v41 = vpop.f32.mrf.mxu0  ;;  %v3672_v31 = vpop.f32.mrf.mxu1 }
 0x395   : > { %v5777_v46 = vpop.f32.mrf.mxu0  ;;  %v5809_v24 = vpop.f32.mrf.mxu1 }
 0x397   : > { %v3522_v0 = vpop.f32.mrf.mxu0  ;;  %v3676_v2 = vpop.f32.mrf.mxu1 }
 0x399   : > { %v5780_v57 = vpop.f32.mrf.mxu0  ;;  %v5812_v48 = vpop.f32.mrf.mxu1 }
 0x39b   : > { %v3524_v18 = vpop.f32.mrf.mxu0  ;;  %v3679_v35 = vpop.f32.mrf.mxu1 }
 0x39d   : > { %v5781_v52 = vpop.f32.mrf.mxu0  ;;  %v5813_v4 = vpop.f32.mrf.mxu1 }
 0x39f   : > { %v3528_v62 = vpop.f32.mrf.mxu0 }
 0x3a0   : > { %v3535_v28 = vadd.f32 %v3528_v62, %v3411_v1 }
 0x3a1   : > { %v5784_v12 = vpop.f32.mrf.mxu0 }
 0x3a2   : > { %v4995_v12 = vld [vmem:[%s7673_s6] ss:$0 sm:$0xff] }
 0x3a3   : > { %v3531_v47 = vpop.f32.mrf.mxu0 }
 0x3a5   : > { %v5785_v9 = vpop.f32.mrf.mxu0 }
 0x3a7   : > { %v3900_v20 = vpop.f32.mrf.mxu1 }
 0x3a9   : > { %v5860_v53 = vpop.f32.mrf.mxu1 }
 0x3ab   : > { %v3903_v6 = vpop.f32.mrf.mxu1 }
 0x3ad   : > { %v5861_v63 = vpop.f32.mrf.mxu1 }
 0x3af   : > { %v3773_v33 = vpop.f32.mrf.mxu0  ;;  %v3907_v11 = vpop.f32.mrf.mxu1 }
 0x3b0   : > { %v3774_v50 = vadd.f32 %v3773_v33, %v3663_v13 }
 0x3b1   : > { %v5832_v22 = vpop.f32.mrf.mxu0  ;;  %v5864_v27 = vpop.f32.mrf.mxu1 }
 0x3b2   : > { %v3919_v17 = vadd.f32 %v3900_v20, %v3774_v50 }
 0x3b3   : > { %v3776_v32 = vpop.f32.mrf.mxu0  ;;  %v3909_v42 = vpop.f32.mrf.mxu1 }
 0x3b4   : > { %v4300_v16 = vadd.f32 %v3919_v17, %v3534_v23 }
 0x3b5   : > { %v5833_v58 = vpop.f32.mrf.mxu0  ;;  %v5865_v19 = vpop.f32.mrf.mxu1 }
 0x3b7   : > { %v3780_v54 = vpop.f32.mrf.mxu0  ;;  %v3913_v5 = vpop.f32.mrf.mxu1 }
 0x3b9   : > { %v5836_v55 = vpop.f32.mrf.mxu0  ;;  %v5868_v10 = vpop.f32.mrf.mxu1 }
 0x3bb   : > { %v3782_v3 = vpop.f32.mrf.mxu0  ;;  %v3916_v40 = vpop.f32.mrf.mxu1 }
 0x3bc   : > { %v4342_v3 = vld [vmem:[%s7675_s8] sm:$0x1] }
 0x3bd   : > { %v5837_v37 = vpop.f32.mrf.mxu0  ;;  %v5869_v51 = vpop.f32.mrf.mxu1 }
 0x3bf   : > { %v3786_v14 = vpop.f32.mrf.mxu0 }
 0x3c0   : > { %v3787_v26 = vadd.f32 %v3786_v14, %v3676_v2 }
 0x3c1   : > { %v5840_v39 = vpop.f32.mrf.mxu0 }
 0x3c2   : > { %v3920_v49 = vadd.f32 %v3913_v5, %v3787_v26 }
 0x3c3   : > { %v3789_v45 = vpop.f32.mrf.mxu0 }
 0x3c4   : > { %v4301_v21 = vadd.f32 %v3920_v49, %v3535_v28 }
 0x3c5   : > { %v5841_v29 = vpop.f32.mrf.mxu0 }
 0x3c7   : > { %v4154_v1 = vpop.f32.mrf.mxu1 }
 0x3c9   : > { %v5916_v38 = vpop.f32.mrf.mxu1 }
 0x3cb   : > { %v4157_v43 = vpop.f32.mrf.mxu1 }
 0x3cd   : > { %v5917_v15 = vpop.f32.mrf.mxu1 }
 0x3cf   : > { %v4046_v61 = vpop.f32.mrf.mxu0  ;;  %v4161_v56 = vpop.f32.mrf.mxu1 }
 0x3d0   : > { %v4155_v18 = vadd.f32 %v4154_v1, %v4046_v61 }
 0x3d1   : > { %v5888_v13 = vpop.f32.mrf.mxu0  ;;  %v5920_v30 = vpop.f32.mrf.mxu1 }
 0x3d3   : > { %v4049_v34 = vpop.f32.mrf.mxu0  ;;  %v4163_v8 = vpop.f32.mrf.mxu1 }
 0x3d5   : > { %v5889_v59 = vpop.f32.mrf.mxu0  ;;  %v5921_v44 = vpop.f32.mrf.mxu1 }
 0x3d7   : > { %v4053_v60 = vpop.f32.mrf.mxu0  ;;  %v4167_v25 = vpop.f32.mrf.mxu1 }
 0x3d9   : > { %v5892_v23 = vpop.f32.mrf.mxu0  ;;  %v5924_v7 = vpop.f32.mrf.mxu1 }
 0x3db   : > { %v4055_v36 = vpop.f32.mrf.mxu0  ;;  %v4170_v41 = vpop.f32.mrf.mxu1 }
 0x3dd   : > { %v5893_v31 = vpop.f32.mrf.mxu0  ;;  %v5925_v46 = vpop.f32.mrf.mxu1 }
 0x3df   : > { %v4059_v24 = vpop.f32.mrf.mxu0 }
 0x3e0   : > { %v4168_v63 = vadd.f32 %v4167_v25, %v4059_v24 }
 0x3e1   : > { %v5896_v0 = vpop.f32.mrf.mxu0 }
 0x3e3   : > { %v4062_v2 = vpop.f32.mrf.mxu0 }
 0x3e5   : > { %v5897_v57 = vpop.f32.mrf.mxu0 }
 0x3ef   : > { %v4279_v48 = vpop.f32.mrf.mxu0 }
 0x3f0   : > { %v4298_v52 = vadd.f32 %v4279_v48, %v4155_v18 }
 0x3f1   : > { %v5944_v35 = vpop.f32.mrf.mxu0 }
 0x3f2   : > { %v4302_v28 = vadd.f32 %v4300_v16, %v4298_v52 }
 0x3f3   : > { %v4282_v4 = vpop.f32.mrf.mxu0 }
 0x3f4   : > { %v4311_v20 = vadd.f32 %v4995_v12, %v4302_v28 }
 0x3f5   : > { %v5945_v62 = vpop.f32.mrf.mxu0 }
 0x3f6   : > { %v4313_v33 = vmax.f32 %v4311_v20, 0.0 }
 0x3f7   : > { %v4286_v47 = vpop.f32.mrf.mxu0 }
 0x3f8   : > { %v4316_v27 = vrot.slane %v4313_v33, 2 }
 0x3f9   : > { %v5948_v9 = vpop.f32.mrf.mxu0 }
 0x3fa   : > { %v4318_v58 = vmax.f32 %v4313_v33, %v4316_v27 }
 0x3fb   : > { %v4288_v53 = vpop.f32.mrf.mxu0 }
 0x3fd   : > { %v5949_v6 = vpop.f32.mrf.mxu0 }
 0x3ff   : > { %v4292_v11 = vpop.f32.mrf.mxu0 }
 0x400   : > { %v4299_v50 = vadd.f32 %v4292_v11, %v4168_v63 }
 0x401   : > { %v5952_v22 = vpop.f32.mrf.mxu0 }
 0x402   : > { %v4303_v17 = vadd.f32 %v4301_v21, %v4299_v50 }
 0x403   : > { %v4295_v32 = vpop.f32.mrf.mxu0 }
 0x404   : > { %v4312_v42 = vadd.f32 %v4995_v12, %v4303_v17 }
 0x405   : > { %v5953_v16 = vpop.f32.mrf.mxu0 }
 0x406   : > { %v4314_v19 = vmax.f32 %v4312_v42, 0.0 }
 0x408   : > { %v4319_v54 = vmax.f32 %v4318_v58, %v4314_v19  ;;  %v4321_v5 = vrot.slane %v4314_v19, 2 }
 0x40a   : > { %v4323_v55 = vmax.f32 %v4319_v54, %v4321_v5 }
 0x40c   : > { %v4325_v10 = vpack.c.bf16 %v4323_v55, %v4323_v55 }
 0x40e   : > { %5971 = vmatmul.mubr.bf16.vlgmr.msra.gmra.mxu1 %v4325_v10 }
 0x4ce   : > { %v4425_v40 = vpop.f32.mrf.mxu1 }
 0x4cf   : > { %v4426_v37 = vadd.f32 %v4425_v40, %v4342_v3 }
 0x4d0   : > { %v5972_v51 = vpop.f32.mrf.mxu1 }
 0x4d1   : > { %4431 = vst [vmem:[%s324_s26] sm:$0x1] %v4426_v37 }
 0x4d2   : > { %v4428_v14 = vpop.f32.mrf.mxu1 }
 0x4d3   : > { %6259 = shalt.err (!%p6256_p3)
}
 0x4d4   : > { %s6260_s23 = scalar_lea.hbm %s7626_s29, 16  ;;  %s6264_s26 = scalar_lea.hbm %s7676_s9, 32 }
 0x4d5   : > { %p6261_p4 = scmp.ne.s32.totalorder %s7626_s29, %s6260_s23  ;;  %p6265_p9 = scmp.lt.s32.totalorder %s7626_s29, %s7676_s9 }
 0x4d6   : > { %p6266_p10 = scmp.lt.s32.totalorder %s6264_s26, %s6260_s23 }
 0x4d7   : > { %p6262_p7 = pnand %p6261_p4, %p6399_p5 }
 0x4d8   : > { %p6267_p11 = por %p6266_p10, %p6265_p9 }
 0x4d9   : > { %p6263_p8 = pneg %p6262_p7 }
 0x4db   : > { %p6268_p12 = pnand %p6267_p11, %p6263_p8 }
 0x4dd   : > { %6271 = shalt.err (!%p6268_p12)
}
 0x4de   : > { %5975 = dma.vmem_to_hbm [thread:$0]  (%p6399_p5), %s7628_s24, 16, %s7626_s29, %s4433_s14   ;;  %v5973_v26 = vpop.f32.mrf.mxu1 }
 0x4df PF: > { %p5981_p13 = scmp.ge.s32.totalorder %s6306_s12, 2  ;;  %s4457_s21 = sand.u32 1, %s6294_s30  }
 0x4e0   : > { %s4458_s13 = scalar_lea.sflag [#allocation5], %s4457_s21 }
 0x4e1   : > { %p5978_p0 = pnand %p5981_p13, %p6403_p6 }
 0x4e3   : > { %p5979_p1 = pneg %p5978_p0 }
 0x4e5   : > { %6289 = dma.done.wait (%p5979_p1), %s4458_s13, 16  }
 0x4e6   : > { %6291 = vsyncadd (%p5979_p1), %s4458_s13, 4294967280  ;;  %p19_p2 = scmp.ge.s32.totalorder %s6386_s15, 4   ;;  %s7692_s30 = smov %s6298_s10 }
 0x4e7   : > { %s7693_s10 = smov %s6302_s11  ;;  %s7694_s11 = smov %s6397_s18 }
 0x4e8   : > { %s7695_s12 = smov %s6386_s15  ;;  %21 = sbr.rel (!%p19_p2) target bundleno = 3 (0x3), region = 107 }
 0x4ed   :  { %4462 = vsyncpa [#allocation5], 1 }
 0x4ee   :  { %4464 = vsyncpa [#allocation5 + $0x1], 1 }

</bundles_post_ra>
